<compile_context>
chip_gen: v7x
topology: tpu7x:2x2x1
jax: 0.10.0
libtpu: 0.0.40
codegen_flags: <defaults>
</compile_context>

<pallas_src>
import jax
import jax.numpy as jnp
from jax.experimental import pallas as pl
from jax.experimental.pallas import tpu as pltpu


def _bidir_lstm_layer_kernel(len_ref, gx_ref, whh_ref, y_ref, hf_ref, cf_ref):
    """One grid step == one direction (fwd/bwd) of one LSTM layer, whole sequence.

    len_ref : (B, 1) int32   sequence lengths
    gx_ref  : (T, 4, B, H)   precomputed x @ W_ih + b, gate-major (i, f, g, o)
    whh_ref : (4, H, H)      recurrent weights, gate-major
    y_ref   : (T, B, H)      per-direction outputs, original time order
    hf_ref  : (B, H)         final hidden state
    cf_ref  : (B, H)         final cell state
    """
    d = pl.program_id(0)                    # 0 = forward, 1 = backward
    T, _, B, H = gx_ref.shape
    lens = len_ref[...]                     # (B, 1) int32

    # Recurrent weights loaded once, kept in vregs across the time loop.
    w_i = whh_ref[0]
    w_f = whh_ref[1]
    w_g = whh_ref[2]
    w_o = whh_ref[3]

    def step(s, carry):
        h, c = carry
        # original-time index: forward walks 0..T-1, backward walks T-1..0
        t = jnp.where(d == 0, s, T - 1 - s)
        gx = gx_ref[t]                                       # (4, B, H)
        i_g = jax.nn.sigmoid(gx[0] + jnp.dot(h, w_i, preferred_element_type=jnp.float32))
        f_g = jax.nn.sigmoid(gx[1] + jnp.dot(h, w_f, preferred_element_type=jnp.float32))
        g_g = jnp.tanh(gx[2] + jnp.dot(h, w_g, preferred_element_type=jnp.float32))
        o_g = jax.nn.sigmoid(gx[3] + jnp.dot(h, w_o, preferred_element_type=jnp.float32))
        c_new = f_g * c + i_g * g_g
        h_new = o_g * jnp.tanh(c_new)

        valid = t < lens                                     # (B, 1) packed-sequence mask
        c_nxt = jnp.where(valid, c_new, c)                   # carry state across pads
        h_nxt = jnp.where(valid, h_new, h)
        y_ref[t] = jnp.where(valid, h_new, 0.0)              # pad_packed pads with zeros
        return h_nxt, c_nxt

    z = jnp.zeros((B, H), jnp.float32)
    h_fin, c_fin = jax.lax.fori_loop(0, T, step, (z, z), unroll=True)
    hf_ref[...] = h_fin
    cf_ref[...] = c_fin


def bidir_lstm_layer(gx, whh_g, lengths_col):
    """Run one bidirectional LSTM layer.

    gx          : (2, T, 4, B, H)  precomputed input gates per direction (gate-major)
    whh_g       : (2, 4, H, H)     recurrent weights per direction (gate-major)
    lengths_col : (B, 1) int32
    returns y_dirs (2, T, B, H), h_final (2, B, H), c_final (2, B, H)
    """
    _, T, _, B, H = gx.shape
    y, h_f, c_f = pl.pallas_call(
        _bidir_lstm_layer_kernel,
        grid=(2,),                                            # direction axis (independent)
        in_specs=[
            pl.BlockSpec((B, 1), lambda d: (0, 0)),           # lengths (loaded once)
            pl.BlockSpec((None, T, 4, B, H), lambda d: (d, 0, 0, 0, 0)),
            pl.BlockSpec((None, 4, H, H), lambda d: (d, 0, 0, 0)),
        ],
        out_specs=(
            pl.BlockSpec((None, T, B, H), lambda d: (d, 0, 0, 0)),
            pl.BlockSpec((None, B, H), lambda d: (d, 0, 0)),
            pl.BlockSpec((None, B, H), lambda d: (d, 0, 0)),
        ),
        out_shape=(
            jax.ShapeDtypeStruct((2, T, B, H), jnp.float32),
            jax.ShapeDtypeStruct((2, B, H), jnp.float32),
            jax.ShapeDtypeStruct((2, B, H), jnp.float32),
        ),
        compiler_params=pltpu.CompilerParams(
            dimension_semantics=("parallel",)),               # fwd/bwd -> 2 TCs on v7x
    )(lengths_col, gx, whh_g)
    return y, h_f, c_f


def init_params(key, input_size, hidden_size, embed_size, n_layers):
    """Deterministic parameter init (same shapes as the PyTorch module)."""
    H = hidden_size // 2                        # bidirectional halves the hidden size
    params = {"n_layers": n_layers, "H": H}
    key, k_emb = jax.random.split(key)
    params["embedding"] = jax.random.normal(
        k_emb, (input_size, embed_size), jnp.float32)

    layers = []
    for layer in range(n_layers):
        din = embed_size if layer == 0 else 2 * H
        k_scale = 1.0 / jnp.sqrt(jnp.float32(H))
        wih_t, whh_g, bias = [], [], []
        for _dir in range(2):                   # 0 = forward, 1 = backward
            key, k1, k2, k3, k4 = jax.random.split(key, 5)
            w_ih = jax.random.uniform(k1, (4 * H, din), jnp.float32, -k_scale, k_scale)
            w_hh = jax.random.uniform(k2, (4 * H, H), jnp.float32, -k_scale, k_scale)
            b_ih = jax.random.uniform(k3, (4 * H,), jnp.float32, -k_scale, k_scale)
            b_hh = jax.random.uniform(k4, (4 * H,), jnp.float32, -k_scale, k_scale)
            wih_t.append(w_ih.T)                                        # (din, 4H)
            whh_g.append(w_hh.T.reshape(H, 4, H).transpose(1, 0, 2))    # (4, H, H) gate-major
            bias.append(b_ih + b_hh)                                    # (4H,)
        layers.append({
            "wih_t": jnp.stack(wih_t),      # (2, din, 4H)
            "whh_g": jnp.stack(whh_g),      # (2, 4, H, H)
            "b": jnp.stack(bias),           # (2, 4H)
        })
    params["lstm"] = layers
    return params


def lstm_encoder_forward(params, input_seqs, input_lengths):
    """Equivalent of LSTMEncoderRNN.forward(input_seqs, input_lengths, hidden=None)."""
    H = params["H"]
    n_layers = params["n_layers"]
    emb = params["embedding"][input_seqs]          # (T, B, E) embedding gather (XLA glue)
    T, B, _ = emb.shape
    lengths_col = input_lengths.astype(jnp.int32).reshape(B, 1)

    def to_gate_major(g):                          # (T, B, 4H) -> (T, 4, B, H)
        return g.reshape(T, B, 4, H).transpose(0, 2, 1, 3)

    y_dirs = None                                  # (2, T, B, H) per-direction outputs
    h_list, c_list = [], []
    for layer in range(n_layers):
        p = params["lstm"][layer]
        # Hoisted input projection: one big matmul per direction, done by XLA.
        if layer == 0:
            gx_f = jnp.einsum("tbe,eg->tbg", emb, p["wih_t"][0]) + p["b"][0]
            gx_b = jnp.einsum("tbe,eg->tbg", emb, p["wih_t"][1]) + p["b"][1]
        else:
            # Feed the previous layer's per-direction outputs directly (no explicit
            # (T,B,2H) concat): W_ih rows 0..H-1 hit fwd features, H..2H-1 hit bwd.
            w = p["wih_t"].reshape(2, 2, H, 4 * H)             # [dir_out][dir_in, H, 4H]
            gx_f = jnp.einsum("dtbh,dhg->tbg", y_dirs, w[0]) + p["b"][0]
            gx_b = jnp.einsum("dtbh,dhg->tbg", y_dirs, w[1]) + p["b"][1]
        gx = jnp.stack([to_gate_major(gx_f), to_gate_major(gx_b)], axis=0)  # (2,T,4,B,H)

        y_dirs, h_f, c_f = bidir_lstm_layer(gx, p["whh_g"], lengths_col)
        h_list.extend([h_f[0], h_f[1]])            # torch order: l_fwd, l_bwd per layer
        c_list.extend([c_f[0], c_f[1]])
        # TODO(synk): nn.LSTM inter-layer dropout is train-mode only; omitted (inference).

    outputs = jnp.concatenate([y_dirs[0], y_dirs[1]], axis=-1)   # (T, B, hidden_size)

    # hidden in torch layout (n_layers*2, B, H), then _cat_directions -> (n_layers, B, 2H)
    h_all = jnp.stack(h_list, axis=0)
    c_all = jnp.stack(c_list, axis=0)
    h_cat = jnp.concatenate([h_all[0::2], h_all[1::2]], axis=2)
    c_cat = jnp.concatenate([c_all[0::2], c_all[1::2]], axis=2)
    return outputs, (h_cat, c_cat)


if __name__ == "__main__":
    input_size = 20      # vocab
    hidden_size = 32     # per-direction hidden = 16
    embed_size = 16
    n_layers = 2
    T, B = 8, 4

    key = jax.random.PRNGKey(0)
    key, k_seq = jax.random.split(key)
    params = init_params(key, input_size, hidden_size, embed_size, n_layers)

    input_seqs = jax.random.randint(k_seq, (T, B), 0, input_size, dtype=jnp.int32)
    input_lengths = jnp.array([8, 7, 5, 3], dtype=jnp.int32)   # sorted desc (pack_padded)

    outputs, (h_n, c_n) = lstm_encoder_forward(params, input_seqs, input_lengths)
    outputs = jax.block_until_ready(outputs)
    h_n = jax.block_until_ready(h_n)
    c_n = jax.block_until_ready(c_n)

    assert outputs.shape == (T, B, hidden_size)
    assert h_n.shape == (n_layers, B, hidden_size)
    assert c_n.shape == (n_layers, B, hidden_size)
    assert bool(jnp.all(jnp.isfinite(outputs)))
    assert bool(jnp.all(jnp.isfinite(h_n))) and bool(jnp.all(jnp.isfinite(c_n)))
    print("KERNEL_OK")
</pallas_src>

<mosaic_0001>
module attributes {stable_mosaic.version = 11 : i64} {
  func.func @_bidir_lstm_layer_kernel(%arg0: i32, %arg1: memref<4x1xi32, #tpu.memory_space<vmem>>, %arg2: memref<1x8x4x4x16xf32, #tpu.memory_space<vmem>>, %arg3: memref<1x4x16x16xf32, #tpu.memory_space<vmem>>, %arg4: memref<1x8x4x16xf32, #tpu.memory_space<vmem>>, %arg5: memref<1x4x16xf32, #tpu.memory_space<vmem>>, %arg6: memref<1x4x16xf32, #tpu.memory_space<vmem>>) attributes {dimension_semantics = [#tpu.dimension_semantics<parallel>], iteration_bounds = array<i64: 2>, scalar_prefetch = 0 : i64, scratch_operands = 0 : i64, tpu.core_type = #tpu.core_type<tc>, window_params = [{pipeline_mode = #tpu.pipeline_mode<synchronous>, transform_indices = @transform_0, window_bounds = array<i64: 4, 1>}, {transform_indices = @transform_1, window_bounds = array<i64: 1, 8, 4, 4, 16>}, {transform_indices = @transform_2, window_bounds = array<i64: 1, 4, 16, 16>}, {transform_indices = @transform_3, window_bounds = array<i64: 1, 8, 4, 16>}, {transform_indices = @transform_4, window_bounds = array<i64: 1, 4, 16>}, {transform_indices = @transform_5, window_bounds = array<i64: 1, 4, 16>}]} {
    %c0 = arith.constant 0 : index
    %c0_0 = arith.constant 0 : index
    %0 = vector.load %arg1[%c0, %c0_0] : memref<4x1xi32, #tpu.memory_space<vmem>>, vector<4x1xi32>
    %c0_1 = arith.constant 0 : index
    %c0_2 = arith.constant 0 : index
    %c0_3 = arith.constant 0 : index
    %c0_4 = arith.constant 0 : index
    %1 = vector.load %arg3[%c0_1, %c0_2, %c0_3, %c0_4] : memref<1x4x16x16xf32, #tpu.memory_space<vmem>>, vector<1x1x16x16xf32>
    %2 = vector.shape_cast %1 : vector<1x1x16x16xf32> to vector<16x16xf32>
    %c0_5 = arith.constant 0 : index
    %c1 = arith.constant 1 : index
    %c0_6 = arith.constant 0 : index
    %c0_7 = arith.constant 0 : index
    %3 = vector.load %arg3[%c0_5, %c1, %c0_6, %c0_7] : memref<1x4x16x16xf32, #tpu.memory_space<vmem>>, vector<1x1x16x16xf32>
    %4 = vector.shape_cast %3 : vector<1x1x16x16xf32> to vector<16x16xf32>
    %c0_8 = arith.constant 0 : index
    %c2 = arith.constant 2 : index
    %c0_9 = arith.constant 0 : index
    %c0_10 = arith.constant 0 : index
    %5 = vector.load %arg3[%c0_8, %c2, %c0_9, %c0_10] : memref<1x4x16x16xf32, #tpu.memory_space<vmem>>, vector<1x1x16x16xf32>
    %6 = vector.shape_cast %5 : vector<1x1x16x16xf32> to vector<16x16xf32>
    %c0_11 = arith.constant 0 : index
    %c3 = arith.constant 3 : index
    %c0_12 = arith.constant 0 : index
    %c0_13 = arith.constant 0 : index
    %7 = vector.load %arg3[%c0_11, %c3, %c0_12, %c0_13] : memref<1x4x16x16xf32, #tpu.memory_space<vmem>>, vector<1x1x16x16xf32>
    %8 = vector.shape_cast %7 : vector<1x1x16x16xf32> to vector<16x16xf32>
    %cst = arith.constant 0.000000e+00 : f32
    %9 = vector.broadcast %cst : f32 to vector<4x16xf32>
    %c0_i32 = arith.constant 0 : i32
    %c0_i32_14 = arith.constant 0 : i32
    %10 = arith.cmpi eq, %arg0, %c0_i32_14 : i32
    %c7_i32 = arith.constant 7 : i32
    %11 = arith.subi %c7_i32, %c0_i32 : i32
    %12 = arith.select %10, %c0_i32, %11 : i32
    %c0_15 = arith.constant 0 : index
    %13 = arith.index_cast %12 : i32 to index
    %c0_16 = arith.constant 0 : index
    %c0_17 = arith.constant 0 : index
    %c0_18 = arith.constant 0 : index
    %14 = vector.load %arg2[%c0_15, %13, %c0_16, %c0_17, %c0_18] : memref<1x8x4x4x16xf32, #tpu.memory_space<vmem>>, vector<1x1x4x4x16xf32>
    %15 = vector.shape_cast %14 : vector<1x1x4x4x16xf32> to vector<4x4x16xf32>
    %16 = vector.extract_strided_slice %15 {offsets = [0, 0, 0], sizes = [1, 4, 16], strides = [1, 1, 1]} : vector<4x4x16xf32> to vector<1x4x16xf32>
    %17 = vector.shape_cast %16 : vector<1x4x16xf32> to vector<4x16xf32>
    %cst_19 = arith.constant dense<0.000000e+00> : vector<4x16xf32>
    %18 = tpu.matmul %9, %2, %cst_19 {dimension_numbers = #tpu.dot_dimension_numbers<[1], [0], [0], [1], [0, 0, 1, 1], [], []>} : vector<4x16xf32>, vector<16x16xf32>, vector<4x16xf32> -> vector<4x16xf32>
    %19 = arith.addf %17, %18 : vector<4x16xf32>
    %20 = arith.negf %19 : vector<4x16xf32>
    %21 = math.exp %20 : vector<4x16xf32>
    %cst_20 = arith.constant 1.000000e+00 : f32
    %22 = vector.broadcast %cst_20 : f32 to vector<4x16xf32>
    %23 = arith.addf %22, %21 : vector<4x16xf32>
    %24 = arith.divf %22, %23 : vector<4x16xf32>
    %25 = vector.extract_strided_slice %15 {offsets = [1, 0, 0], sizes = [1, 4, 16], strides = [1, 1, 1]} : vector<4x4x16xf32> to vector<1x4x16xf32>
    %26 = vector.shape_cast %25 : vector<1x4x16xf32> to vector<4x16xf32>
    %cst_21 = arith.constant dense<0.000000e+00> : vector<4x16xf32>
    %27 = tpu.matmul %9, %4, %cst_21 {dimension_numbers = #tpu.dot_dimension_numbers<[1], [0], [0], [1], [0, 0, 1, 1], [], []>} : vector<4x16xf32>, vector<16x16xf32>, vector<4x16xf32> -> vector<4x16xf32>
    %28 = arith.addf %26, %27 : vector<4x16xf32>
    %29 = arith.negf %28 : vector<4x16xf32>
    %30 = math.exp %29 : vector<4x16xf32>
    %cst_22 = arith.constant 1.000000e+00 : f32
    %31 = vector.broadcast %cst_22 : f32 to vector<4x16xf32>
    %32 = arith.addf %31, %30 : vector<4x16xf32>
    %33 = arith.divf %31, %32 : vector<4x16xf32>
    %34 = vector.extract_strided_slice %15 {offsets = [2, 0, 0], sizes = [1, 4, 16], strides = [1, 1, 1]} : vector<4x4x16xf32> to vector<1x4x16xf32>
    %35 = vector.shape_cast %34 : vector<1x4x16xf32> to vector<4x16xf32>
    %cst_23 = arith.constant dense<0.000000e+00> : vector<4x16xf32>
    %36 = tpu.matmul %9, %6, %cst_23 {dimension_numbers = #tpu.dot_dimension_numbers<[1], [0], [0], [1], [0, 0, 1, 1], [], []>} : vector<4x16xf32>, vector<16x16xf32>, vector<4x16xf32> -> vector<4x16xf32>
    %37 = arith.addf %35, %36 : vector<4x16xf32>
    %38 = math.tanh %37 : vector<4x16xf32>
    %39 = vector.extract_strided_slice %15 {offsets = [3, 0, 0], sizes = [1, 4, 16], strides = [1, 1, 1]} : vector<4x4x16xf32> to vector<1x4x16xf32>
    %40 = vector.shape_cast %39 : vector<1x4x16xf32> to vector<4x16xf32>
    %cst_24 = arith.constant dense<0.000000e+00> : vector<4x16xf32>
    %41 = tpu.matmul %9, %8, %cst_24 {dimension_numbers = #tpu.dot_dimension_numbers<[1], [0], [0], [1], [0, 0, 1, 1], [], []>} : vector<4x16xf32>, vector<16x16xf32>, vector<4x16xf32> -> vector<4x16xf32>
    %42 = arith.addf %40, %41 : vector<4x16xf32>
    %43 = arith.negf %42 : vector<4x16xf32>
    %44 = math.exp %43 : vector<4x16xf32>
    %cst_25 = arith.constant 1.000000e+00 : f32
    %45 = vector.broadcast %cst_25 : f32 to vector<4x16xf32>
    %46 = arith.addf %45, %44 : vector<4x16xf32>
    %47 = arith.divf %45, %46 : vector<4x16xf32>
    %48 = arith.mulf %33, %9 : vector<4x16xf32>
    %49 = arith.mulf %24, %38 : vector<4x16xf32>
    %50 = arith.addf %48, %49 : vector<4x16xf32>
    %51 = math.tanh %50 : vector<4x16xf32>
    %52 = arith.mulf %47, %51 : vector<4x16xf32>
    %53 = vector.broadcast %12 : i32 to vector<4x1xi32>
    %54 = arith.cmpi slt, %53, %0 : vector<4x1xi32>
    %55 = vector.shape_cast %54 : vector<4x1xi1> to vector<4x1xi1>
    %56 = vector.broadcast %55 : vector<4x1xi1> to vector<4x16xi1>
    %57 = arith.select %56, %50, %9 : vector<4x16xi1>, vector<4x16xf32>
    %58 = vector.shape_cast %54 : vector<4x1xi1> to vector<4x1xi1>
    %59 = vector.broadcast %58 : vector<4x1xi1> to vector<4x16xi1>
    %60 = arith.select %59, %52, %9 : vector<4x16xi1>, vector<4x16xf32>
    %cst_26 = arith.constant 0.000000e+00 : f32
    %61 = vector.shape_cast %54 : vector<4x1xi1> to vector<4x1xi1>
    %62 = vector.broadcast %61 : vector<4x1xi1> to vector<4x16xi1>
    %63 = vector.broadcast %cst_26 : f32 to vector<4x16xf32>
    %64 = arith.select %62, %52, %63 : vector<4x16xi1>, vector<4x16xf32>
    %c0_27 = arith.constant 0 : index
    %65 = arith.index_cast %12 : i32 to index
    %c0_28 = arith.constant 0 : index
    %c0_29 = arith.constant 0 : index
    %66 = vector.load %arg4[%c0_27, %65, %c0_28, %c0_29] : memref<1x8x4x16xf32, #tpu.memory_space<vmem>>, vector<1x1x4x16xf32>
    %67 = vector.shape_cast %66 : vector<1x1x4x16xf32> to vector<4x16xf32>
    %68 = vector.shape_cast %64 : vector<4x16xf32> to vector<1x1x4x16xf32>
    tpu.vector_store %arg4[%c0_27, %65, %c0_28, %c0_29], %68 {strides = array<i32>} : memref<1x8x4x16xf32, #tpu.memory_space<vmem>>, vector<1x1x4x16xf32>,
    %c1_i32 = arith.constant 1 : i32
    %c0_i32_30 = arith.constant 0 : i32
    %69 = arith.cmpi eq, %arg0, %c0_i32_30 : i32
    %c7_i32_31 = arith.constant 7 : i32
    %70 = arith.subi %c7_i32_31, %c1_i32 : i32
    %71 = arith.select %69, %c1_i32, %70 : i32
    %c0_32 = arith.constant 0 : index
    %72 = arith.index_cast %71 : i32 to index
    %c0_33 = arith.constant 0 : index
    %c0_34 = arith.constant 0 : index
    %c0_35 = arith.constant 0 : index
    %73 = vector.load %arg2[%c0_32, %72, %c0_33, %c0_34, %c0_35] : memref<1x8x4x4x16xf32, #tpu.memory_space<vmem>>, vector<1x1x4x4x16xf32>
    %74 = vector.shape_cast %73 : vector<1x1x4x4x16xf32> to vector<4x4x16xf32>
    %75 = vector.extract_strided_slice %74 {offsets = [0, 0, 0], sizes = [1, 4, 16], strides = [1, 1, 1]} : vector<4x4x16xf32> to vector<1x4x16xf32>
    %76 = vector.shape_cast %75 : vector<1x4x16xf32> to vector<4x16xf32>
    %cst_36 = arith.constant dense<0.000000e+00> : vector<4x16xf32>
    %77 = tpu.matmul %60, %2, %cst_36 {dimension_numbers = #tpu.dot_dimension_numbers<[1], [0], [0], [1], [0, 0, 1, 1], [], []>} : vector<4x16xf32>, vector<16x16xf32>, vector<4x16xf32> -> vector<4x16xf32>
    %78 = arith.addf %76, %77 : vector<4x16xf32>
    %79 = arith.negf %78 : vector<4x16xf32>
    %80 = math.exp %79 : vector<4x16xf32>
    %cst_37 = arith.constant 1.000000e+00 : f32
    %81 = vector.broadcast %cst_37 : f32 to vector<4x16xf32>
    %82 = arith.addf %81, %80 : vector<4x16xf32>
    %83 = arith.divf %81, %82 : vector<4x16xf32>
    %84 = vector.extract_strided_slice %74 {offsets = [1, 0, 0], sizes = [1, 4, 16], strides = [1, 1, 1]} : vector<4x4x16xf32> to vector<1x4x16xf32>
    %85 = vector.shape_cast %84 : vector<1x4x16xf32> to vector<4x16xf32>
    %cst_38 = arith.constant dense<0.000000e+00> : vector<4x16xf32>
    %86 = tpu.matmul %60, %4, %cst_38 {dimension_numbers = #tpu.dot_dimension_numbers<[1], [0], [0], [1], [0, 0, 1, 1], [], []>} : vector<4x16xf32>, vector<16x16xf32>, vector<4x16xf32> -> vector<4x16xf32>
    %87 = arith.addf %85, %86 : vector<4x16xf32>
    %88 = arith.negf %87 : vector<4x16xf32>
    %89 = math.exp %88 : vector<4x16xf32>
    %cst_39 = arith.constant 1.000000e+00 : f32
    %90 = vector.broadcast %cst_39 : f32 to vector<4x16xf32>
    %91 = arith.addf %90, %89 : vector<4x16xf32>
    %92 = arith.divf %90, %91 : vector<4x16xf32>
    %93 = vector.extract_strided_slice %74 {offsets = [2, 0, 0], sizes = [1, 4, 16], strides = [1, 1, 1]} : vector<4x4x16xf32> to vector<1x4x16xf32>
    %94 = vector.shape_cast %93 : vector<1x4x16xf32> to vector<4x16xf32>
    %cst_40 = arith.constant dense<0.000000e+00> : vector<4x16xf32>
    %95 = tpu.matmul %60, %6, %cst_40 {dimension_numbers = #tpu.dot_dimension_numbers<[1], [0], [0], [1], [0, 0, 1, 1], [], []>} : vector<4x16xf32>, vector<16x16xf32>, vector<4x16xf32> -> vector<4x16xf32>
    %96 = arith.addf %94, %95 : vector<4x16xf32>
    %97 = math.tanh %96 : vector<4x16xf32>
    %98 = vector.extract_strided_slice %74 {offsets = [3, 0, 0], sizes = [1, 4, 16], strides = [1, 1, 1]} : vector<4x4x16xf32> to vector<1x4x16xf32>
    %99 = vector.shape_cast %98 : vector<1x4x16xf32> to vector<4x16xf32>
    %cst_41 = arith.constant dense<0.000000e+00> : vector<4x16xf32>
    %100 = tpu.matmul %60, %8, %cst_41 {dimension_numbers = #tpu.dot_dimension_numbers<[1], [0], [0], [1], [0, 0, 1, 1], [], []>} : vector<4x16xf32>, vector<16x16xf32>, vector<4x16xf32> -> vector<4x16xf32>
    %101 = arith.addf %99, %100 : vector<4x16xf32>
    %102 = arith.negf %101 : vector<4x16xf32>
    %103 = math.exp %102 : vector<4x16xf32>
    %cst_42 = arith.constant 1.000000e+00 : f32
    %104 = vector.broadcast %cst_42 : f32 to vector<4x16xf32>
    %105 = arith.addf %104, %103 : vector<4x16xf32>
    %106 = arith.divf %104, %105 : vector<4x16xf32>
    %107 = arith.mulf %92, %57 : vector<4x16xf32>
    %108 = arith.mulf %83, %97 : vector<4x16xf32>
    %109 = arith.addf %107, %108 : vector<4x16xf32>
    %110 = math.tanh %109 : vector<4x16xf32>
    %111 = arith.mulf %106, %110 : vector<4x16xf32>
    %112 = vector.broadcast %71 : i32 to vector<4x1xi32>
    %113 = arith.cmpi slt, %112, %0 : vector<4x1xi32>
    %114 = vector.shape_cast %113 : vector<4x1xi1> to vector<4x1xi1>
    %115 = vector.broadcast %114 : vector<4x1xi1> to vector<4x16xi1>
    %116 = arith.select %115, %109, %57 : vector<4x16xi1>, vector<4x16xf32>
    %117 = vector.shape_cast %113 : vector<4x1xi1> to vector<4x1xi1>
    %118 = vector.broadcast %117 : vector<4x1xi1> to vector<4x16xi1>
    %119 = arith.select %118, %111, %60 : vector<4x16xi1>, vector<4x16xf32>
    %cst_43 = arith.constant 0.000000e+00 : f32
    %120 = vector.shape_cast %113 : vector<4x1xi1> to vector<4x1xi1>
    %121 = vector.broadcast %120 : vector<4x1xi1> to vector<4x16xi1>
    %122 = vector.broadcast %cst_43 : f32 to vector<4x16xf32>
    %123 = arith.select %121, %111, %122 : vector<4x16xi1>, vector<4x16xf32>
    %c0_44 = arith.constant 0 : index
    %124 = arith.index_cast %71 : i32 to index
    %c0_45 = arith.constant 0 : index
    %c0_46 = arith.constant 0 : index
    %125 = vector.load %arg4[%c0_44, %124, %c0_45, %c0_46] : memref<1x8x4x16xf32, #tpu.memory_space<vmem>>, vector<1x1x4x16xf32>
    %126 = vector.shape_cast %125 : vector<1x1x4x16xf32> to vector<4x16xf32>
    %127 = vector.shape_cast %123 : vector<4x16xf32> to vector<1x1x4x16xf32>
    tpu.vector_store %arg4[%c0_44, %124, %c0_45, %c0_46], %127 {strides = array<i32>} : memref<1x8x4x16xf32, #tpu.memory_space<vmem>>, vector<1x1x4x16xf32>,
    %c2_i32 = arith.constant 2 : i32
    %c0_i32_47 = arith.constant 0 : i32
    %128 = arith.cmpi eq, %arg0, %c0_i32_47 : i32
    %c7_i32_48 = arith.constant 7 : i32
    %129 = arith.subi %c7_i32_48, %c2_i32 : i32
    %130 = arith.select %128, %c2_i32, %129 : i32
    %c0_49 = arith.constant 0 : index
    %131 = arith.index_cast %130 : i32 to index
    %c0_50 = arith.constant 0 : index
    %c0_51 = arith.constant 0 : index
    %c0_52 = arith.constant 0 : index
    %132 = vector.load %arg2[%c0_49, %131, %c0_50, %c0_51, %c0_52] : memref<1x8x4x4x16xf32, #tpu.memory_space<vmem>>, vector<1x1x4x4x16xf32>
    %133 = vector.shape_cast %132 : vector<1x1x4x4x16xf32> to vector<4x4x16xf32>
    %134 = vector.extract_strided_slice %133 {offsets = [0, 0, 0], sizes = [1, 4, 16], strides = [1, 1, 1]} : vector<4x4x16xf32> to vector<1x4x16xf32>
    %135 = vector.shape_cast %134 : vector<1x4x16xf32> to vector<4x16xf32>
    %cst_53 = arith.constant dense<0.000000e+00> : vector<4x16xf32>
    %136 = tpu.matmul %119, %2, %cst_53 {dimension_numbers = #tpu.dot_dimension_numbers<[1], [0], [0], [1], [0, 0, 1, 1], [], []>} : vector<4x16xf32>, vector<16x16xf32>, vector<4x16xf32> -> vector<4x16xf32>
    %137 = arith.addf %135, %136 : vector<4x16xf32>
    %138 = arith.negf %137 : vector<4x16xf32>
    %139 = math.exp %138 : vector<4x16xf32>
    %cst_54 = arith.constant 1.000000e+00 : f32
    %140 = vector.broadcast %cst_54 : f32 to vector<4x16xf32>
    %141 = arith.addf %140, %139 : vector<4x16xf32>
    %142 = arith.divf %140, %141 : vector<4x16xf32>
    %143 = vector.extract_strided_slice %133 {offsets = [1, 0, 0], sizes = [1, 4, 16], strides = [1, 1, 1]} : vector<4x4x16xf32> to vector<1x4x16xf32>
    %144 = vector.shape_cast %143 : vector<1x4x16xf32> to vector<4x16xf32>
    %cst_55 = arith.constant dense<0.000000e+00> : vector<4x16xf32>
    %145 = tpu.matmul %119, %4, %cst_55 {dimension_numbers = #tpu.dot_dimension_numbers<[1], [0], [0], [1], [0, 0, 1, 1], [], []>} : vector<4x16xf32>, vector<16x16xf32>, vector<4x16xf32> -> vector<4x16xf32>
    %146 = arith.addf %144, %145 : vector<4x16xf32>
    %147 = arith.negf %146 : vector<4x16xf32>
    %148 = math.exp %147 : vector<4x16xf32>
    %cst_56 = arith.constant 1.000000e+00 : f32
    %149 = vector.broadcast %cst_56 : f32 to vector<4x16xf32>
    %150 = arith.addf %149, %148 : vector<4x16xf32>
    %151 = arith.divf %149, %150 : vector<4x16xf32>
    %152 = vector.extract_strided_slice %133 {offsets = [2, 0, 0], sizes = [1, 4, 16], strides = [1, 1, 1]} : vector<4x4x16xf32> to vector<1x4x16xf32>
    %153 = vector.shape_cast %152 : vector<1x4x16xf32> to vector<4x16xf32>
    %cst_57 = arith.constant dense<0.000000e+00> : vector<4x16xf32>
    %154 = tpu.matmul %119, %6, %cst_57 {dimension_numbers = #tpu.dot_dimension_numbers<[1], [0], [0], [1], [0, 0, 1, 1], [], []>} : vector<4x16xf32>, vector<16x16xf32>, vector<4x16xf32> -> vector<4x16xf32>
    %155 = arith.addf %153, %154 : vector<4x16xf32>
    %156 = math.tanh %155 : vector<4x16xf32>
    %157 = vector.extract_strided_slice %133 {offsets = [3, 0, 0], sizes = [1, 4, 16], strides = [1, 1, 1]} : vector<4x4x16xf32> to vector<1x4x16xf32>
    %158 = vector.shape_cast %157 : vector<1x4x16xf32> to vector<4x16xf32>
    %cst_58 = arith.constant dense<0.000000e+00> : vector<4x16xf32>
    %159 = tpu.matmul %119, %8, %cst_58 {dimension_numbers = #tpu.dot_dimension_numbers<[1], [0], [0], [1], [0, 0, 1, 1], [], []>} : vector<4x16xf32>, vector<16x16xf32>, vector<4x16xf32> -> vector<4x16xf32>
    %160 = arith.addf %158, %159 : vector<4x16xf32>
    %161 = arith.negf %160 : vector<4x16xf32>
    %162 = math.exp %161 : vector<4x16xf32>
    %cst_59 = arith.constant 1.000000e+00 : f32
    %163 = vector.broadcast %cst_59 : f32 to vector<4x16xf32>
    %164 = arith.addf %163, %162 : vector<4x16xf32>
    %165 = arith.divf %163, %164 : vector<4x16xf32>
    %166 = arith.mulf %151, %116 : vector<4x16xf32>
    %167 = arith.mulf %142, %156 : vector<4x16xf32>
    %168 = arith.addf %166, %167 : vector<4x16xf32>
    %169 = math.tanh %168 : vector<4x16xf32>
    %170 = arith.mulf %165, %169 : vector<4x16xf32>
    %171 = vector.broadcast %130 : i32 to vector<4x1xi32>
    %172 = arith.cmpi slt, %171, %0 : vector<4x1xi32>
    %173 = vector.shape_cast %172 : vector<4x1xi1> to vector<4x1xi1>
    %174 = vector.broadcast %173 : vector<4x1xi1> to vector<4x16xi1>
    %175 = arith.select %174, %168, %116 : vector<4x16xi1>, vector<4x16xf32>
    %176 = vector.shape_cast %172 : vector<4x1xi1> to vector<4x1xi1>
    %177 = vector.broadcast %176 : vector<4x1xi1> to vector<4x16xi1>
    %178 = arith.select %177, %170, %119 : vector<4x16xi1>, vector<4x16xf32>
    %cst_60 = arith.constant 0.000000e+00 : f32
    %179 = vector.shape_cast %172 : vector<4x1xi1> to vector<4x1xi1>
    %180 = vector.broadcast %179 : vector<4x1xi1> to vector<4x16xi1>
    %181 = vector.broadcast %cst_60 : f32 to vector<4x16xf32>
    %182 = arith.select %180, %170, %181 : vector<4x16xi1>, vector<4x16xf32>
    %c0_61 = arith.constant 0 : index
    %183 = arith.index_cast %130 : i32 to index
    %c0_62 = arith.constant 0 : index
    %c0_63 = arith.constant 0 : index
    %184 = vector.load %arg4[%c0_61, %183, %c0_62, %c0_63] : memref<1x8x4x16xf32, #tpu.memory_space<vmem>>, vector<1x1x4x16xf32>
    %185 = vector.shape_cast %184 : vector<1x1x4x16xf32> to vector<4x16xf32>
    %186 = vector.shape_cast %182 : vector<4x16xf32> to vector<1x1x4x16xf32>
    tpu.vector_store %arg4[%c0_61, %183, %c0_62, %c0_63], %186 {strides = array<i32>} : memref<1x8x4x16xf32, #tpu.memory_space<vmem>>, vector<1x1x4x16xf32>,
    %c3_i32 = arith.constant 3 : i32
    %c0_i32_64 = arith.constant 0 : i32
    %187 = arith.cmpi eq, %arg0, %c0_i32_64 : i32
    %c7_i32_65 = arith.constant 7 : i32
    %188 = arith.subi %c7_i32_65, %c3_i32 : i32
    %189 = arith.select %187, %c3_i32, %188 : i32
    %c0_66 = arith.constant 0 : index
    %190 = arith.index_cast %189 : i32 to index
    %c0_67 = arith.constant 0 : index
    %c0_68 = arith.constant 0 : index
    %c0_69 = arith.constant 0 : index
    %191 = vector.load %arg2[%c0_66, %190, %c0_67, %c0_68, %c0_69] : memref<1x8x4x4x16xf32, #tpu.memory_space<vmem>>, vector<1x1x4x4x16xf32>
    %192 = vector.shape_cast %191 : vector<1x1x4x4x16xf32> to vector<4x4x16xf32>
    %193 = vector.extract_strided_slice %192 {offsets = [0, 0, 0], sizes = [1, 4, 16], strides = [1, 1, 1]} : vector<4x4x16xf32> to vector<1x4x16xf32>
    %194 = vector.shape_cast %193 : vector<1x4x16xf32> to vector<4x16xf32>
    %cst_70 = arith.constant dense<0.000000e+00> : vector<4x16xf32>
    %195 = tpu.matmul %178, %2, %cst_70 {dimension_numbers = #tpu.dot_dimension_numbers<[1], [0], [0], [1], [0, 0, 1, 1], [], []>} : vector<4x16xf32>, vector<16x16xf32>, vector<4x16xf32> -> vector<4x16xf32>
    %196 = arith.addf %194, %195 : vector<4x16xf32>
    %197 = arith.negf %196 : vector<4x16xf32>
    %198 = math.exp %197 : vector<4x16xf32>
    %cst_71 = arith.constant 1.000000e+00 : f32
    %199 = vector.broadcast %cst_71 : f32 to vector<4x16xf32>
    %200 = arith.addf %199, %198 : vector<4x16xf32>
    %201 = arith.divf %199, %200 : vector<4x16xf32>
    %202 = vector.extract_strided_slice %192 {offsets = [1, 0, 0], sizes = [1, 4, 16], strides = [1, 1, 1]} : vector<4x4x16xf32> to vector<1x4x16xf32>
    %203 = vector.shape_cast %202 : vector<1x4x16xf32> to vector<4x16xf32>
    %cst_72 = arith.constant dense<0.000000e+00> : vector<4x16xf32>
    %204 = tpu.matmul %178, %4, %cst_72 {dimension_numbers = #tpu.dot_dimension_numbers<[1], [0], [0], [1], [0, 0, 1, 1], [], []>} : vector<4x16xf32>, vector<16x16xf32>, vector<4x16xf32> -> vector<4x16xf32>
    %205 = arith.addf %203, %204 : vector<4x16xf32>
    %206 = arith.negf %205 : vector<4x16xf32>
    %207 = math.exp %206 : vector<4x16xf32>
    %cst_73 = arith.constant 1.000000e+00 : f32
    %208 = vector.broadcast %cst_73 : f32 to vector<4x16xf32>
    %209 = arith.addf %208, %207 : vector<4x16xf32>
    %210 = arith.divf %208, %209 : vector<4x16xf32>
    %211 = vector.extract_strided_slice %192 {offsets = [2, 0, 0], sizes = [1, 4, 16], strides = [1, 1, 1]} : vector<4x4x16xf32> to vector<1x4x16xf32>
    %212 = vector.shape_cast %211 : vector<1x4x16xf32> to vector<4x16xf32>
    %cst_74 = arith.constant dense<0.000000e+00> : vector<4x16xf32>
    %213 = tpu.matmul %178, %6, %cst_74 {dimension_numbers = #tpu.dot_dimension_numbers<[1], [0], [0], [1], [0, 0, 1, 1], [], []>} : vector<4x16xf32>, vector<16x16xf32>, vector<4x16xf32> -> vector<4x16xf32>
    %214 = arith.addf %212, %213 : vector<4x16xf32>
    %215 = math.tanh %214 : vector<4x16xf32>
    %216 = vector.extract_strided_slice %192 {offsets = [3, 0, 0], sizes = [1, 4, 16], strides = [1, 1, 1]} : vector<4x4x16xf32> to vector<1x4x16xf32>
    %217 = vector.shape_cast %216 : vector<1x4x16xf32> to vector<4x16xf32>
    %cst_75 = arith.constant dense<0.000000e+00> : vector<4x16xf32>
    %218 = tpu.matmul %178, %8, %cst_75 {dimension_numbers = #tpu.dot_dimension_numbers<[1], [0], [0], [1], [0, 0, 1, 1], [], []>} : vector<4x16xf32>, vector<16x16xf32>, vector<4x16xf32> -> vector<4x16xf32>
    %219 = arith.addf %217, %218 : vector<4x16xf32>
    %220 = arith.negf %219 : vector<4x16xf32>
    %221 = math.exp %220 : vector<4x16xf32>
    %cst_76 = arith.constant 1.000000e+00 : f32
    %222 = vector.broadcast %cst_76 : f32 to vector<4x16xf32>
    %223 = arith.addf %222, %221 : vector<4x16xf32>
    %224 = arith.divf %222, %223 : vector<4x16xf32>
    %225 = arith.mulf %210, %175 : vector<4x16xf32>
    %226 = arith.mulf %201, %215 : vector<4x16xf32>
    %227 = arith.addf %225, %226 : vector<4x16xf32>
    %228 = math.tanh %227 : vector<4x16xf32>
    %229 = arith.mulf %224, %228 : vector<4x16xf32>
    %230 = vector.broadcast %189 : i32 to vector<4x1xi32>
    %231 = arith.cmpi slt, %230, %0 : vector<4x1xi32>
    %232 = vector.shape_cast %231 : vector<4x1xi1> to vector<4x1xi1>
    %233 = vector.broadcast %232 : vector<4x1xi1> to vector<4x16xi1>
    %234 = arith.select %233, %227, %175 : vector<4x16xi1>, vector<4x16xf32>
    %235 = vector.shape_cast %231 : vector<4x1xi1> to vector<4x1xi1>
    %236 = vector.broadcast %235 : vector<4x1xi1> to vector<4x16xi1>
    %237 = arith.select %236, %229, %178 : vector<4x16xi1>, vector<4x16xf32>
    %cst_77 = arith.constant 0.000000e+00 : f32
    %238 = vector.shape_cast %231 : vector<4x1xi1> to vector<4x1xi1>
    %239 = vector.broadcast %238 : vector<4x1xi1> to vector<4x16xi1>
    %240 = vector.broadcast %cst_77 : f32 to vector<4x16xf32>
    %241 = arith.select %239, %229, %240 : vector<4x16xi1>, vector<4x16xf32>
    %c0_78 = arith.constant 0 : index
    %242 = arith.index_cast %189 : i32 to index
    %c0_79 = arith.constant 0 : index
    %c0_80 = arith.constant 0 : index
    %243 = vector.load %arg4[%c0_78, %242, %c0_79, %c0_80] : memref<1x8x4x16xf32, #tpu.memory_space<vmem>>, vector<1x1x4x16xf32>
    %244 = vector.shape_cast %243 : vector<1x1x4x16xf32> to vector<4x16xf32>
    %245 = vector.shape_cast %241 : vector<4x16xf32> to vector<1x1x4x16xf32>
    tpu.vector_store %arg4[%c0_78, %242, %c0_79, %c0_80], %245 {strides = array<i32>} : memref<1x8x4x16xf32, #tpu.memory_space<vmem>>, vector<1x1x4x16xf32>,
    %c4_i32 = arith.constant 4 : i32
    %c0_i32_81 = arith.constant 0 : i32
    %246 = arith.cmpi eq, %arg0, %c0_i32_81 : i32
    %c7_i32_82 = arith.constant 7 : i32
    %247 = arith.subi %c7_i32_82, %c4_i32 : i32
    %248 = arith.select %246, %c4_i32, %247 : i32
    %c0_83 = arith.constant 0 : index
    %249 = arith.index_cast %248 : i32 to index
    %c0_84 = arith.constant 0 : index
    %c0_85 = arith.constant 0 : index
    %c0_86 = arith.constant 0 : index
    %250 = vector.load %arg2[%c0_83, %249, %c0_84, %c0_85, %c0_86] : memref<1x8x4x4x16xf32, #tpu.memory_space<vmem>>, vector<1x1x4x4x16xf32>
    %251 = vector.shape_cast %250 : vector<1x1x4x4x16xf32> to vector<4x4x16xf32>
    %252 = vector.extract_strided_slice %251 {offsets = [0, 0, 0], sizes = [1, 4, 16], strides = [1, 1, 1]} : vector<4x4x16xf32> to vector<1x4x16xf32>
    %253 = vector.shape_cast %252 : vector<1x4x16xf32> to vector<4x16xf32>
    %cst_87 = arith.constant dense<0.000000e+00> : vector<4x16xf32>
    %254 = tpu.matmul %237, %2, %cst_87 {dimension_numbers = #tpu.dot_dimension_numbers<[1], [0], [0], [1], [0, 0, 1, 1], [], []>} : vector<4x16xf32>, vector<16x16xf32>, vector<4x16xf32> -> vector<4x16xf32>
    %255 = arith.addf %253, %254 : vector<4x16xf32>
    %256 = arith.negf %255 : vector<4x16xf32>
    %257 = math.exp %256 : vector<4x16xf32>
    %cst_88 = arith.constant 1.000000e+00 : f32
    %258 = vector.broadcast %cst_88 : f32 to vector<4x16xf32>
    %259 = arith.addf %258, %257 : vector<4x16xf32>
    %260 = arith.divf %258, %259 : vector<4x16xf32>
    %261 = vector.extract_strided_slice %251 {offsets = [1, 0, 0], sizes = [1, 4, 16], strides = [1, 1, 1]} : vector<4x4x16xf32> to vector<1x4x16xf32>
    %262 = vector.shape_cast %261 : vector<1x4x16xf32> to vector<4x16xf32>
    %cst_89 = arith.constant dense<0.000000e+00> : vector<4x16xf32>
    %263 = tpu.matmul %237, %4, %cst_89 {dimension_numbers = #tpu.dot_dimension_numbers<[1], [0], [0], [1], [0, 0, 1, 1], [], []>} : vector<4x16xf32>, vector<16x16xf32>, vector<4x16xf32> -> vector<4x16xf32>
    %264 = arith.addf %262, %263 : vector<4x16xf32>
    %265 = arith.negf %264 : vector<4x16xf32>
    %266 = math.exp %265 : vector<4x16xf32>
    %cst_90 = arith.constant 1.000000e+00 : f32
    %267 = vector.broadcast %cst_90 : f32 to vector<4x16xf32>
    %268 = arith.addf %267, %266 : vector<4x16xf32>
    %269 = arith.divf %267, %268 : vector<4x16xf32>
    %270 = vector.extract_strided_slice %251 {offsets = [2, 0, 0], sizes = [1, 4, 16], strides = [1, 1, 1]} : vector<4x4x16xf32> to vector<1x4x16xf32>
    %271 = vector.shape_cast %270 : vector<1x4x16xf32> to vector<4x16xf32>
    %cst_91 = arith.constant dense<0.000000e+00> : vector<4x16xf32>
    %272 = tpu.matmul %237, %6, %cst_91 {dimension_numbers = #tpu.dot_dimension_numbers<[1], [0], [0], [1], [0, 0, 1, 1], [], []>} : vector<4x16xf32>, vector<16x16xf32>, vector<4x16xf32> -> vector<4x16xf32>
    %273 = arith.addf %271, %272 : vector<4x16xf32>
    %274 = math.tanh %273 : vector<4x16xf32>
    %275 = vector.extract_strided_slice %251 {offsets = [3, 0, 0], sizes = [1, 4, 16], strides = [1, 1, 1]} : vector<4x4x16xf32> to vector<1x4x16xf32>
    %276 = vector.shape_cast %275 : vector<1x4x16xf32> to vector<4x16xf32>
    %cst_92 = arith.constant dense<0.000000e+00> : vector<4x16xf32>
    %277 = tpu.matmul %237, %8, %cst_92 {dimension_numbers = #tpu.dot_dimension_numbers<[1], [0], [0], [1], [0, 0, 1, 1], [], []>} : vector<4x16xf32>, vector<16x16xf32>, vector<4x16xf32> -> vector<4x16xf32>
    %278 = arith.addf %276, %277 : vector<4x16xf32>
    %279 = arith.negf %278 : vector<4x16xf32>
    %280 = math.exp %279 : vector<4x16xf32>
    %cst_93 = arith.constant 1.000000e+00 : f32
    %281 = vector.broadcast %cst_93 : f32 to vector<4x16xf32>
    %282 = arith.addf %281, %280 : vector<4x16xf32>
    %283 = arith.divf %281, %282 : vector<4x16xf32>
    %284 = arith.mulf %269, %234 : vector<4x16xf32>
    %285 = arith.mulf %260, %274 : vector<4x16xf32>
    %286 = arith.addf %284, %285 : vector<4x16xf32>
    %287 = math.tanh %286 : vector<4x16xf32>
    %288 = arith.mulf %283, %287 : vector<4x16xf32>
    %289 = vector.broadcast %248 : i32 to vector<4x1xi32>
    %290 = arith.cmpi slt, %289, %0 : vector<4x1xi32>
    %291 = vector.shape_cast %290 : vector<4x1xi1> to vector<4x1xi1>
    %292 = vector.broadcast %291 : vector<4x1xi1> to vector<4x16xi1>
    %293 = arith.select %292, %286, %234 : vector<4x16xi1>, vector<4x16xf32>
    %294 = vector.shape_cast %290 : vector<4x1xi1> to vector<4x1xi1>
    %295 = vector.broadcast %294 : vector<4x1xi1> to vector<4x16xi1>
    %296 = arith.select %295, %288, %237 : vector<4x16xi1>, vector<4x16xf32>
    %cst_94 = arith.constant 0.000000e+00 : f32
    %297 = vector.shape_cast %290 : vector<4x1xi1> to vector<4x1xi1>
    %298 = vector.broadcast %297 : vector<4x1xi1> to vector<4x16xi1>
    %299 = vector.broadcast %cst_94 : f32 to vector<4x16xf32>
    %300 = arith.select %298, %288, %299 : vector<4x16xi1>, vector<4x16xf32>
    %c0_95 = arith.constant 0 : index
    %301 = arith.index_cast %248 : i32 to index
    %c0_96 = arith.constant 0 : index
    %c0_97 = arith.constant 0 : index
    %302 = vector.load %arg4[%c0_95, %301, %c0_96, %c0_97] : memref<1x8x4x16xf32, #tpu.memory_space<vmem>>, vector<1x1x4x16xf32>
    %303 = vector.shape_cast %302 : vector<1x1x4x16xf32> to vector<4x16xf32>
    %304 = vector.shape_cast %300 : vector<4x16xf32> to vector<1x1x4x16xf32>
    tpu.vector_store %arg4[%c0_95, %301, %c0_96, %c0_97], %304 {strides = array<i32>} : memref<1x8x4x16xf32, #tpu.memory_space<vmem>>, vector<1x1x4x16xf32>,
    %c5_i32 = arith.constant 5 : i32
    %c0_i32_98 = arith.constant 0 : i32
    %305 = arith.cmpi eq, %arg0, %c0_i32_98 : i32
    %c7_i32_99 = arith.constant 7 : i32
    %306 = arith.subi %c7_i32_99, %c5_i32 : i32
    %307 = arith.select %305, %c5_i32, %306 : i32
    %c0_100 = arith.constant 0 : index
    %308 = arith.index_cast %307 : i32 to index
    %c0_101 = arith.constant 0 : index
    %c0_102 = arith.constant 0 : index
    %c0_103 = arith.constant 0 : index
    %309 = vector.load %arg2[%c0_100, %308, %c0_101, %c0_102, %c0_103] : memref<1x8x4x4x16xf32, #tpu.memory_space<vmem>>, vector<1x1x4x4x16xf32>
    %310 = vector.shape_cast %309 : vector<1x1x4x4x16xf32> to vector<4x4x16xf32>
    %311 = vector.extract_strided_slice %310 {offsets = [0, 0, 0], sizes = [1, 4, 16], strides = [1, 1, 1]} : vector<4x4x16xf32> to vector<1x4x16xf32>
    %312 = vector.shape_cast %311 : vector<1x4x16xf32> to vector<4x16xf32>
    %cst_104 = arith.constant dense<0.000000e+00> : vector<4x16xf32>
    %313 = tpu.matmul %296, %2, %cst_104 {dimension_numbers = #tpu.dot_dimension_numbers<[1], [0], [0], [1], [0, 0, 1, 1], [], []>} : vector<4x16xf32>, vector<16x16xf32>, vector<4x16xf32> -> vector<4x16xf32>
    %314 = arith.addf %312, %313 : vector<4x16xf32>
    %315 = arith.negf %314 : vector<4x16xf32>
    %316 = math.exp %315 : vector<4x16xf32>
    %cst_105 = arith.constant 1.000000e+00 : f32
    %317 = vector.broadcast %cst_105 : f32 to vector<4x16xf32>
    %318 = arith.addf %317, %316 : vector<4x16xf32>
    %319 = arith.divf %317, %318 : vector<4x16xf32>
    %320 = vector.extract_strided_slice %310 {offsets = [1, 0, 0], sizes = [1, 4, 16], strides = [1, 1, 1]} : vector<4x4x16xf32> to vector<1x4x16xf32>
    %321 = vector.shape_cast %320 : vector<1x4x16xf32> to vector<4x16xf32>
    %cst_106 = arith.constant dense<0.000000e+00> : vector<4x16xf32>
    %322 = tpu.matmul %296, %4, %cst_106 {dimension_numbers = #tpu.dot_dimension_numbers<[1], [0], [0], [1], [0, 0, 1, 1], [], []>} : vector<4x16xf32>, vector<16x16xf32>, vector<4x16xf32> -> vector<4x16xf32>
    %323 = arith.addf %321, %322 : vector<4x16xf32>
    %324 = arith.negf %323 : vector<4x16xf32>
    %325 = math.exp %324 : vector<4x16xf32>
    %cst_107 = arith.constant 1.000000e+00 : f32
    %326 = vector.broadcast %cst_107 : f32 to vector<4x16xf32>
    %327 = arith.addf %326, %325 : vector<4x16xf32>
    %328 = arith.divf %326, %327 : vector<4x16xf32>
    %329 = vector.extract_strided_slice %310 {offsets = [2, 0, 0], sizes = [1, 4, 16], strides = [1, 1, 1]} : vector<4x4x16xf32> to vector<1x4x16xf32>
    %330 = vector.shape_cast %329 : vector<1x4x16xf32> to vector<4x16xf32>
    %cst_108 = arith.constant dense<0.000000e+00> : vector<4x16xf32>
    %331 = tpu.matmul %296, %6, %cst_108 {dimension_numbers = #tpu.dot_dimension_numbers<[1], [0], [0], [1], [0, 0, 1, 1], [], []>} : vector<4x16xf32>, vector<16x16xf32>, vector<4x16xf32> -> vector<4x16xf32>
    %332 = arith.addf %330, %331 : vector<4x16xf32>
    %333 = math.tanh %332 : vector<4x16xf32>
    %334 = vector.extract_strided_slice %310 {offsets = [3, 0, 0], sizes = [1, 4, 16], strides = [1, 1, 1]} : vector<4x4x16xf32> to vector<1x4x16xf32>
    %335 = vector.shape_cast %334 : vector<1x4x16xf32> to vector<4x16xf32>
    %cst_109 = arith.constant dense<0.000000e+00> : vector<4x16xf32>
    %336 = tpu.matmul %296, %8, %cst_109 {dimension_numbers = #tpu.dot_dimension_numbers<[1], [0], [0], [1], [0, 0, 1, 1], [], []>} : vector<4x16xf32>, vector<16x16xf32>, vector<4x16xf32> -> vector<4x16xf32>
    %337 = arith.addf %335, %336 : vector<4x16xf32>
    %338 = arith.negf %337 : vector<4x16xf32>
    %339 = math.exp %338 : vector<4x16xf32>
    %cst_110 = arith.constant 1.000000e+00 : f32
    %340 = vector.broadcast %cst_110 : f32 to vector<4x16xf32>
    %341 = arith.addf %340, %339 : vector<4x16xf32>
    %342 = arith.divf %340, %341 : vector<4x16xf32>
    %343 = arith.mulf %328, %293 : vector<4x16xf32>
    %344 = arith.mulf %319, %333 : vector<4x16xf32>
    %345 = arith.addf %343, %344 : vector<4x16xf32>
    %346 = math.tanh %345 : vector<4x16xf32>
    %347 = arith.mulf %342, %346 : vector<4x16xf32>
    %348 = vector.broadcast %307 : i32 to vector<4x1xi32>
    %349 = arith.cmpi slt, %348, %0 : vector<4x1xi32>
    %350 = vector.shape_cast %349 : vector<4x1xi1> to vector<4x1xi1>
    %351 = vector.broadcast %350 : vector<4x1xi1> to vector<4x16xi1>
    %352 = arith.select %351, %345, %293 : vector<4x16xi1>, vector<4x16xf32>
    %353 = vector.shape_cast %349 : vector<4x1xi1> to vector<4x1xi1>
    %354 = vector.broadcast %353 : vector<4x1xi1> to vector<4x16xi1>
    %355 = arith.select %354, %347, %296 : vector<4x16xi1>, vector<4x16xf32>
    %cst_111 = arith.constant 0.000000e+00 : f32
    %356 = vector.shape_cast %349 : vector<4x1xi1> to vector<4x1xi1>
    %357 = vector.broadcast %356 : vector<4x1xi1> to vector<4x16xi1>
    %358 = vector.broadcast %cst_111 : f32 to vector<4x16xf32>
    %359 = arith.select %357, %347, %358 : vector<4x16xi1>, vector<4x16xf32>
    %c0_112 = arith.constant 0 : index
    %360 = arith.index_cast %307 : i32 to index
    %c0_113 = arith.constant 0 : index
    %c0_114 = arith.constant 0 : index
    %361 = vector.load %arg4[%c0_112, %360, %c0_113, %c0_114] : memref<1x8x4x16xf32, #tpu.memory_space<vmem>>, vector<1x1x4x16xf32>
    %362 = vector.shape_cast %361 : vector<1x1x4x16xf32> to vector<4x16xf32>
    %363 = vector.shape_cast %359 : vector<4x16xf32> to vector<1x1x4x16xf32>
    tpu.vector_store %arg4[%c0_112, %360, %c0_113, %c0_114], %363 {strides = array<i32>} : memref<1x8x4x16xf32, #tpu.memory_space<vmem>>, vector<1x1x4x16xf32>,
    %c6_i32 = arith.constant 6 : i32
    %c0_i32_115 = arith.constant 0 : i32
    %364 = arith.cmpi eq, %arg0, %c0_i32_115 : i32
    %c7_i32_116 = arith.constant 7 : i32
    %365 = arith.subi %c7_i32_116, %c6_i32 : i32
    %366 = arith.select %364, %c6_i32, %365 : i32
    %c0_117 = arith.constant 0 : index
    %367 = arith.index_cast %366 : i32 to index
    %c0_118 = arith.constant 0 : index
    %c0_119 = arith.constant 0 : index
    %c0_120 = arith.constant 0 : index
    %368 = vector.load %arg2[%c0_117, %367, %c0_118, %c0_119, %c0_120] : memref<1x8x4x4x16xf32, #tpu.memory_space<vmem>>, vector<1x1x4x4x16xf32>
    %369 = vector.shape_cast %368 : vector<1x1x4x4x16xf32> to vector<4x4x16xf32>
    %370 = vector.extract_strided_slice %369 {offsets = [0, 0, 0], sizes = [1, 4, 16], strides = [1, 1, 1]} : vector<4x4x16xf32> to vector<1x4x16xf32>
    %371 = vector.shape_cast %370 : vector<1x4x16xf32> to vector<4x16xf32>
    %cst_121 = arith.constant dense<0.000000e+00> : vector<4x16xf32>
    %372 = tpu.matmul %355, %2, %cst_121 {dimension_numbers = #tpu.dot_dimension_numbers<[1], [0], [0], [1], [0, 0, 1, 1], [], []>} : vector<4x16xf32>, vector<16x16xf32>, vector<4x16xf32> -> vector<4x16xf32>
    %373 = arith.addf %371, %372 : vector<4x16xf32>
    %374 = arith.negf %373 : vector<4x16xf32>
    %375 = math.exp %374 : vector<4x16xf32>
    %cst_122 = arith.constant 1.000000e+00 : f32
    %376 = vector.broadcast %cst_122 : f32 to vector<4x16xf32>
    %377 = arith.addf %376, %375 : vector<4x16xf32>
    %378 = arith.divf %376, %377 : vector<4x16xf32>
    %379 = vector.extract_strided_slice %369 {offsets = [1, 0, 0], sizes = [1, 4, 16], strides = [1, 1, 1]} : vector<4x4x16xf32> to vector<1x4x16xf32>
    %380 = vector.shape_cast %379 : vector<1x4x16xf32> to vector<4x16xf32>
    %cst_123 = arith.constant dense<0.000000e+00> : vector<4x16xf32>
    %381 = tpu.matmul %355, %4, %cst_123 {dimension_numbers = #tpu.dot_dimension_numbers<[1], [0], [0], [1], [0, 0, 1, 1], [], []>} : vector<4x16xf32>, vector<16x16xf32>, vector<4x16xf32> -> vector<4x16xf32>
    %382 = arith.addf %380, %381 : vector<4x16xf32>
    %383 = arith.negf %382 : vector<4x16xf32>
    %384 = math.exp %383 : vector<4x16xf32>
    %cst_124 = arith.constant 1.000000e+00 : f32
    %385 = vector.broadcast %cst_124 : f32 to vector<4x16xf32>
    %386 = arith.addf %385, %384 : vector<4x16xf32>
    %387 = arith.divf %385, %386 : vector<4x16xf32>
    %388 = vector.extract_strided_slice %369 {offsets = [2, 0, 0], sizes = [1, 4, 16], strides = [1, 1, 1]} : vector<4x4x16xf32> to vector<1x4x16xf32>
    %389 = vector.shape_cast %388 : vector<1x4x16xf32> to vector<4x16xf32>
    %cst_125 = arith.constant dense<0.000000e+00> : vector<4x16xf32>
    %390 = tpu.matmul %355, %6, %cst_125 {dimension_numbers = #tpu.dot_dimension_numbers<[1], [0], [0], [1], [0, 0, 1, 1], [], []>} : vector<4x16xf32>, vector<16x16xf32>, vector<4x16xf32> -> vector<4x16xf32>
    %391 = arith.addf %389, %390 : vector<4x16xf32>
    %392 = math.tanh %391 : vector<4x16xf32>
    %393 = vector.extract_strided_slice %369 {offsets = [3, 0, 0], sizes = [1, 4, 16], strides = [1, 1, 1]} : vector<4x4x16xf32> to vector<1x4x16xf32>
    %394 = vector.shape_cast %393 : vector<1x4x16xf32> to vector<4x16xf32>
    %cst_126 = arith.constant dense<0.000000e+00> : vector<4x16xf32>
    %395 = tpu.matmul %355, %8, %cst_126 {dimension_numbers = #tpu.dot_dimension_numbers<[1], [0], [0], [1], [0, 0, 1, 1], [], []>} : vector<4x16xf32>, vector<16x16xf32>, vector<4x16xf32> -> vector<4x16xf32>
    %396 = arith.addf %394, %395 : vector<4x16xf32>
    %397 = arith.negf %396 : vector<4x16xf32>
    %398 = math.exp %397 : vector<4x16xf32>
    %cst_127 = arith.constant 1.000000e+00 : f32
    %399 = vector.broadcast %cst_127 : f32 to vector<4x16xf32>
    %400 = arith.addf %399, %398 : vector<4x16xf32>
    %401 = arith.divf %399, %400 : vector<4x16xf32>
    %402 = arith.mulf %387, %352 : vector<4x16xf32>
    %403 = arith.mulf %378, %392 : vector<4x16xf32>
    %404 = arith.addf %402, %403 : vector<4x16xf32>
    %405 = math.tanh %404 : vector<4x16xf32>
    %406 = arith.mulf %401, %405 : vector<4x16xf32>
    %407 = vector.broadcast %366 : i32 to vector<4x1xi32>
    %408 = arith.cmpi slt, %407, %0 : vector<4x1xi32>
    %409 = vector.shape_cast %408 : vector<4x1xi1> to vector<4x1xi1>
    %410 = vector.broadcast %409 : vector<4x1xi1> to vector<4x16xi1>
    %411 = arith.select %410, %404, %352 : vector<4x16xi1>, vector<4x16xf32>
    %412 = vector.shape_cast %408 : vector<4x1xi1> to vector<4x1xi1>
    %413 = vector.broadcast %412 : vector<4x1xi1> to vector<4x16xi1>
    %414 = arith.select %413, %406, %355 : vector<4x16xi1>, vector<4x16xf32>
    %cst_128 = arith.constant 0.000000e+00 : f32
    %415 = vector.shape_cast %408 : vector<4x1xi1> to vector<4x1xi1>
    %416 = vector.broadcast %415 : vector<4x1xi1> to vector<4x16xi1>
    %417 = vector.broadcast %cst_128 : f32 to vector<4x16xf32>
    %418 = arith.select %416, %406, %417 : vector<4x16xi1>, vector<4x16xf32>
    %c0_129 = arith.constant 0 : index
    %419 = arith.index_cast %366 : i32 to index
    %c0_130 = arith.constant 0 : index
    %c0_131 = arith.constant 0 : index
    %420 = vector.load %arg4[%c0_129, %419, %c0_130, %c0_131] : memref<1x8x4x16xf32, #tpu.memory_space<vmem>>, vector<1x1x4x16xf32>
    %421 = vector.shape_cast %420 : vector<1x1x4x16xf32> to vector<4x16xf32>
    %422 = vector.shape_cast %418 : vector<4x16xf32> to vector<1x1x4x16xf32>
    tpu.vector_store %arg4[%c0_129, %419, %c0_130, %c0_131], %422 {strides = array<i32>} : memref<1x8x4x16xf32, #tpu.memory_space<vmem>>, vector<1x1x4x16xf32>,
    %c7_i32_132 = arith.constant 7 : i32
    %c0_i32_133 = arith.constant 0 : i32
    %423 = arith.cmpi eq, %arg0, %c0_i32_133 : i32
    %c7_i32_134 = arith.constant 7 : i32
    %424 = arith.subi %c7_i32_134, %c7_i32_132 : i32
    %425 = arith.select %423, %c7_i32_132, %424 : i32
    %c0_135 = arith.constant 0 : index
    %426 = arith.index_cast %425 : i32 to index
    %c0_136 = arith.constant 0 : index
    %c0_137 = arith.constant 0 : index
    %c0_138 = arith.constant 0 : index
    %427 = vector.load %arg2[%c0_135, %426, %c0_136, %c0_137, %c0_138] : memref<1x8x4x4x16xf32, #tpu.memory_space<vmem>>, vector<1x1x4x4x16xf32>
    %428 = vector.shape_cast %427 : vector<1x1x4x4x16xf32> to vector<4x4x16xf32>
    %429 = vector.extract_strided_slice %428 {offsets = [0, 0, 0], sizes = [1, 4, 16], strides = [1, 1, 1]} : vector<4x4x16xf32> to vector<1x4x16xf32>
    %430 = vector.shape_cast %429 : vector<1x4x16xf32> to vector<4x16xf32>
    %cst_139 = arith.constant dense<0.000000e+00> : vector<4x16xf32>
    %431 = tpu.matmul %414, %2, %cst_139 {dimension_numbers = #tpu.dot_dimension_numbers<[1], [0], [0], [1], [0, 0, 1, 1], [], []>} : vector<4x16xf32>, vector<16x16xf32>, vector<4x16xf32> -> vector<4x16xf32>
    %432 = arith.addf %430, %431 : vector<4x16xf32>
    %433 = arith.negf %432 : vector<4x16xf32>
    %434 = math.exp %433 : vector<4x16xf32>
    %cst_140 = arith.constant 1.000000e+00 : f32
    %435 = vector.broadcast %cst_140 : f32 to vector<4x16xf32>
    %436 = arith.addf %435, %434 : vector<4x16xf32>
    %437 = arith.divf %435, %436 : vector<4x16xf32>
    %438 = vector.extract_strided_slice %428 {offsets = [1, 0, 0], sizes = [1, 4, 16], strides = [1, 1, 1]} : vector<4x4x16xf32> to vector<1x4x16xf32>
    %439 = vector.shape_cast %438 : vector<1x4x16xf32> to vector<4x16xf32>
    %cst_141 = arith.constant dense<0.000000e+00> : vector<4x16xf32>
    %440 = tpu.matmul %414, %4, %cst_141 {dimension_numbers = #tpu.dot_dimension_numbers<[1], [0], [0], [1], [0, 0, 1, 1], [], []>} : vector<4x16xf32>, vector<16x16xf32>, vector<4x16xf32> -> vector<4x16xf32>
    %441 = arith.addf %439, %440 : vector<4x16xf32>
    %442 = arith.negf %441 : vector<4x16xf32>
    %443 = math.exp %442 : vector<4x16xf32>
    %cst_142 = arith.constant 1.000000e+00 : f32
    %444 = vector.broadcast %cst_142 : f32 to vector<4x16xf32>
    %445 = arith.addf %444, %443 : vector<4x16xf32>
    %446 = arith.divf %444, %445 : vector<4x16xf32>
    %447 = vector.extract_strided_slice %428 {offsets = [2, 0, 0], sizes = [1, 4, 16], strides = [1, 1, 1]} : vector<4x4x16xf32> to vector<1x4x16xf32>
    %448 = vector.shape_cast %447 : vector<1x4x16xf32> to vector<4x16xf32>
    %cst_143 = arith.constant dense<0.000000e+00> : vector<4x16xf32>
    %449 = tpu.matmul %414, %6, %cst_143 {dimension_numbers = #tpu.dot_dimension_numbers<[1], [0], [0], [1], [0, 0, 1, 1], [], []>} : vector<4x16xf32>, vector<16x16xf32>, vector<4x16xf32> -> vector<4x16xf32>
    %450 = arith.addf %448, %449 : vector<4x16xf32>
    %451 = math.tanh %450 : vector<4x16xf32>
    %452 = vector.extract_strided_slice %428 {offsets = [3, 0, 0], sizes = [1, 4, 16], strides = [1, 1, 1]} : vector<4x4x16xf32> to vector<1x4x16xf32>
    %453 = vector.shape_cast %452 : vector<1x4x16xf32> to vector<4x16xf32>
    %cst_144 = arith.constant dense<0.000000e+00> : vector<4x16xf32>
    %454 = tpu.matmul %414, %8, %cst_144 {dimension_numbers = #tpu.dot_dimension_numbers<[1], [0], [0], [1], [0, 0, 1, 1], [], []>} : vector<4x16xf32>, vector<16x16xf32>, vector<4x16xf32> -> vector<4x16xf32>
    %455 = arith.addf %453, %454 : vector<4x16xf32>
    %456 = arith.negf %455 : vector<4x16xf32>
    %457 = math.exp %456 : vector<4x16xf32>
    %cst_145 = arith.constant 1.000000e+00 : f32
    %458 = vector.broadcast %cst_145 : f32 to vector<4x16xf32>
    %459 = arith.addf %458, %457 : vector<4x16xf32>
    %460 = arith.divf %458, %459 : vector<4x16xf32>
    %461 = arith.mulf %446, %411 : vector<4x16xf32>
    %462 = arith.mulf %437, %451 : vector<4x16xf32>
    %463 = arith.addf %461, %462 : vector<4x16xf32>
    %464 = math.tanh %463 : vector<4x16xf32>
    %465 = arith.mulf %460, %464 : vector<4x16xf32>
    %466 = vector.broadcast %425 : i32 to vector<4x1xi32>
    %467 = arith.cmpi slt, %466, %0 : vector<4x1xi32>
    %468 = vector.shape_cast %467 : vector<4x1xi1> to vector<4x1xi1>
    %469 = vector.broadcast %468 : vector<4x1xi1> to vector<4x16xi1>
    %470 = arith.select %469, %463, %411 : vector<4x16xi1>, vector<4x16xf32>
    %471 = vector.shape_cast %467 : vector<4x1xi1> to vector<4x1xi1>
    %472 = vector.broadcast %471 : vector<4x1xi1> to vector<4x16xi1>
    %473 = arith.select %472, %465, %414 : vector<4x16xi1>, vector<4x16xf32>
    %cst_146 = arith.constant 0.000000e+00 : f32
    %474 = vector.shape_cast %467 : vector<4x1xi1> to vector<4x1xi1>
    %475 = vector.broadcast %474 : vector<4x1xi1> to vector<4x16xi1>
    %476 = vector.broadcast %cst_146 : f32 to vector<4x16xf32>
    %477 = arith.select %475, %465, %476 : vector<4x16xi1>, vector<4x16xf32>
    %c0_147 = arith.constant 0 : index
    %478 = arith.index_cast %425 : i32 to index
    %c0_148 = arith.constant 0 : index
    %c0_149 = arith.constant 0 : index
    %479 = vector.load %arg4[%c0_147, %478, %c0_148, %c0_149] : memref<1x8x4x16xf32, #tpu.memory_space<vmem>>, vector<1x1x4x16xf32>
    %480 = vector.shape_cast %479 : vector<1x1x4x16xf32> to vector<4x16xf32>
    %481 = vector.shape_cast %477 : vector<4x16xf32> to vector<1x1x4x16xf32>
    tpu.vector_store %arg4[%c0_147, %478, %c0_148, %c0_149], %481 {strides = array<i32>} : memref<1x8x4x16xf32, #tpu.memory_space<vmem>>, vector<1x1x4x16xf32>,
    %c8_i32 = arith.constant 8 : i32
    %c0_150 = arith.constant 0 : index
    %c0_151 = arith.constant 0 : index
    %c0_152 = arith.constant 0 : index
    %482 = vector.load %arg5[%c0_150, %c0_151, %c0_152] : memref<1x4x16xf32, #tpu.memory_space<vmem>>, vector<1x4x16xf32>
    %483 = vector.shape_cast %482 : vector<1x4x16xf32> to vector<4x16xf32>
    %484 = vector.shape_cast %473 : vector<4x16xf32> to vector<1x4x16xf32>
    tpu.vector_store %arg5[%c0_150, %c0_151, %c0_152], %484 {strides = array<i32>} : memref<1x4x16xf32, #tpu.memory_space<vmem>>, vector<1x4x16xf32>,
    %c0_153 = arith.constant 0 : index
    %c0_154 = arith.constant 0 : index
    %c0_155 = arith.constant 0 : index
    %485 = vector.load %arg6[%c0_153, %c0_154, %c0_155] : memref<1x4x16xf32, #tpu.memory_space<vmem>>, vector<1x4x16xf32>
    %486 = vector.shape_cast %485 : vector<1x4x16xf32> to vector<4x16xf32>
    %487 = vector.shape_cast %470 : vector<4x16xf32> to vector<1x4x16xf32>
    tpu.vector_store %arg6[%c0_153, %c0_154, %c0_155], %487 {strides = array<i32>} : memref<1x4x16xf32, #tpu.memory_space<vmem>>, vector<1x4x16xf32>,
    return
  }
  func.func @transform_0(%arg0: i32) -> (i32, i32) {
    %c0_i32 = arith.constant 0 : i32
    %c0_i32_0 = arith.constant 0 : i32
    %c0_i32_1 = arith.constant 0 : i32
    return %c0_i32, %c0_i32_0 : i32, i32
  }
  func.func @transform_1(%arg0: i32) -> (i32, i32, i32, i32, i32) {
    %c0_i32 = arith.constant 0 : i32
    %c0_i32_0 = arith.constant 0 : i32
    %c0_i32_1 = arith.constant 0 : i32
    %c0_i32_2 = arith.constant 0 : i32
    %c0_i32_3 = arith.constant 0 : i32
    return %arg0, %c0_i32, %c0_i32_0, %c0_i32_1, %c0_i32_2 : i32, i32, i32, i32, i32
  }
  func.func @transform_2(%arg0: i32) -> (i32, i32, i32, i32) {
    %c0_i32 = arith.constant 0 : i32
    %c0_i32_0 = arith.constant 0 : i32
    %c0_i32_1 = arith.constant 0 : i32
    %c0_i32_2 = arith.constant 0 : i32
    return %arg0, %c0_i32, %c0_i32_0, %c0_i32_1 : i32, i32, i32, i32
  }
  func.func @transform_3(%arg0: i32) -> (i32, i32, i32, i32) {
    %c0_i32 = arith.constant 0 : i32
    %c0_i32_0 = arith.constant 0 : i32
    %c0_i32_1 = arith.constant 0 : i32
    %c0_i32_2 = arith.constant 0 : i32
    return %arg0, %c0_i32, %c0_i32_0, %c0_i32_1 : i32, i32, i32, i32
  }
  func.func @transform_4(%arg0: i32) -> (i32, i32, i32) {
    %c0_i32 = arith.constant 0 : i32
    %c0_i32_0 = arith.constant 0 : i32
    %c0_i32_1 = arith.constant 0 : i32
    return %arg0, %c0_i32, %c0_i32_0 : i32, i32, i32
  }
  func.func @transform_5(%arg0: i32) -> (i32, i32, i32) {
    %c0_i32 = arith.constant 0 : i32
    %c0_i32_0 = arith.constant 0 : i32
    %c0_i32_1 = arith.constant 0 : i32
    return %arg0, %c0_i32, %c0_i32_0 : i32, i32, i32
  }
}

</mosaic_0001>

<bundles_post_ra>
// kernel: tpu_custom_call.1
= control target key start
LH: loop header
LB: loop body
LE: loop exit
PB: predicated region body
PF: predicated region fallthrough
CT: control target
= control target key end

     0   :  { %s4796_s0 = inlined_call_operand.vmem [shape: s32[4,1], index: 0, kind: input, shape index: {}]   ;;  %s4797_s1 = inlined_call_operand.hbm [shape: f32[2,8,4,4,16], index: 1, kind: input, shape index: {}]   ;;  %s4798_s2 = inlined_call_operand.hbm [shape: f32[2,4,16,16], index: 2, kind: input, shape index: {}]   ;;  %s4799_s3 = inlined_call_operand.hbm [shape: f32[2,8,4,16], index: 3, kind: output, shape index: {0}]   ;;  %s4800_s4 = inlined_call_operand.hbm [shape: f32[2,4,16], index: 4, kind: output, shape index: {1}]   ;;  %s4801_s5 = inlined_call_operand.hbm [shape: f32[2,4,16], index: 5, kind: output, shape index: {2}]  }
   0x1   :  { %4806 = sst [smem:[#allocation15_spill]] %s4796_s0 }
   0x2   :  { %11 = vsyncpa [#allocation3], 0 }
   0x3   :  { %13 = vsyncpa [#allocation3 + $0x1], 0 }
   0x4   :  { %14 = vsyncpa [#allocation6], 0 }
   0x5   :  { %16 = vsyncpa [#allocation6 + $0x1], 0 }
   0x6   :  { %17 = vsyncpa [#allocation4], 0 }
   0x7   :  { %19 = vsyncpa [#allocation4 + $0x1], 0 }
   0x8   :  { %20 = vsyncpa [#allocation9], 0 }
   0x9   :  { %22 = vsyncpa [#allocation9 + $0x1], 0  ;;  %s4159_s18 = smov 0   ;;  %s4161_s19 = smov 0  }
   0xa   :  { %s4163_s20 = smov 0   ;;  %s4165_s21 = smov 0  }
   0xb LB: > { %s4180_s22 = sadd.s32 4294967295, %s4112_s21   ;;  %s4804_s23 = sadd.s32 4294967294, %s4112_s21   ;;  %s4112_s21 = sphi %s4165_s21, %s4830_s21   ;;  %s4108_s20 = sphi %s4163_s20, %s4829_s20   ;;  %s4104_s19 = sphi %s4161_s19, %s4828_s19   ;;  %s4100_s18 = sphi %s4159_s18, %s4827_s18  }
   0xc   : > { %s4184_s24 = sadd.s32 1, %s4112_s21   ;;  %s56_s25 = sadd.s32 1, %s4108_s20 }
   0xd   : > { %s53_s26 = ssub.s32 %s4112_s21, %s4184_s24  ;;  %p63_p0 = scmp.ne.s32.totalorder %s4108_s20, %s4104_s19 }
   0xe   : > { %p54_p1 = scmp.eq.s32.totalorder %s53_s26, 0  ;;  %p64_p2 = scmp.eq.s32.totalorder %s4112_s21, 0 }
   0xf   : > { %p69_p3 = scmp.ne.s32.totalorder %s4104_s19, %s4100_s18  ;;  %p4802_p4 = scmp.eq.s32.totalorder %s4180_s22, 0 }
  0x10   : > { %s4196_s27 = scalar_select %p54_p1, %s4108_s20, %s56_s25  }
  0x11   : > { %p4198_p5 = por %p64_p2, %p63_p0  ;;  %p4204_p6 = por %p4802_p4, %p69_p3 }
  0x12   : > { %p119_p7 = scmp.eq.s32.totalorder %s4180_s22, 1  ;;  %p125_p8 = scmp.eq.s32.totalorder %s4804_s23, 1 }
  0x13   : > { %s4808_s29 = scalar_select %p4204_p6, 1, 0 }
  0x14   : > { %p3748_p10 = scmp.lt.s32.totalorder %s4112_s21, 2  ;;  %p4213_p11 = por %p119_p7, %p63_p0 }
  0x15   : > { %p4217_p12 = por %p125_p8, %p69_p3  ;;  %s4222_s7 = sand.u32 1, %s4108_s20  }
  0x16   : > { %s4809_s30 = scalar_select %p4213_p11, 1, 0 }
  0x17   : > { %s4810_s6 = scalar_select %p4217_p12, 1, 0 }
  0x18   : > { %s3302_s8 = sshll.u32 %s4112_s21, 11  ;;  %s3207_s9 = sshll.u32 %s4222_s7, 7 }
  0x19   : > { %s4229_s12 = scalar_lea.hbm %s4797_s1, %s3302_s8  ;;  %s204_s13 = scalar_lea.vmem [#allocation2], %s3207_s9 }
  0x1a   : > { %s211_s14 = sshll.u32 %s204_s13, 4  ;;  %p4233_p13 = pnand %p3748_p10, %p4198_p5  ;;  %s4237_s14 = int_to_ptr.vmem [resolvable:$true] %s211_s14 }
  0x1b   : > { %s201_s16 = scalar_lea.sflag [#allocation3], %s4222_s7  ;;  %s3922_s17 = scalar_lea.hbm %s4229_s12, 2048 }
  0x1c   : > { %p3923_p0 = scmp.ne.s32.totalorder %s4229_s12, %s3922_s17  ;;  %p3924_p1 = pneg %p4233_p13 }
  0x1d   : > { %s3927_s28 = scalar_lea.hbm %s4797_s1, 4096  ;;  %p3928_p5 = scmp.lt.u32.totalorder %s4229_s12, %s4797_s1 }
  0x1e   : > { %p3925_p2 = pnand %p3924_p1, %p3923_p0  ;;  %p3929_p7 = scmp.lt.u32.totalorder %s3927_s28, %s3922_s17 }
  0x1f   : > { %p3931_p10 = scmp.lt.u32.totalorder %s3922_s17, %s4229_s12 }
  0x20   : > { %p3926_p3 = pneg %p3925_p2  ;;  %p3930_p8 = por %p3929_p7, %p3928_p5 }
  0x22   : > { %p3932_p9 = por %p3931_p10, %p3930_p8 }
  0x24   : > { %p3933_p4 = pnand %p3932_p9, %p3926_p3 }
  0x26   : > { %3936 = shalt.err (!%p3933_p4)
}
  0x27   : > { %s3937_s10 = scalar_lea.vmem %s4237_s14, 2048  ;;  %s4114_s11 = smov [#allocation2]  }
  0x28   : > { %p3938_p0 = scmp.ne.s32.totalorder %s4237_s14, %s3937_s10  ;;  %s3942_s13 = sshll.u32 %s4114_s11, 4  ;;  %s3943_s13 = int_to_ptr.vmem [resolvable:$false] %s3942_s13 }
  0x29   : > { %s3944_s25 = scalar_lea.vmem %s3943_s13, 4096  ;;  %p3945_p11 = scmp.lt.s32.totalorder %s4237_s14, %s3943_s13 }
  0x2a   : > { %p3940_p2 = pnand %p3938_p0, %p3924_p1  ;;  %p3946_p5 = scmp.lt.s32.totalorder %s3944_s25, %s3937_s10 }
  0x2c   : > { %p3941_p12 = pneg %p3940_p2  ;;  %p3947_p7 = por %p3946_p5, %p3945_p11 }
  0x2e   : > { %p3948_p8 = pnand %p3947_p7, %p3941_p12 }
  0x30   : > { %3951 = shalt.err (!%p3948_p8)
}
  0x31   : > { %s4115_s17 = smov 64   ;;  %s4116_s26 = smov 4  }
  0x32   : > { %3734 = dma.hbm_to_vmem [thread:$0]  (!%p4233_p13), %s4229_s12, 2048, %s4237_s14, %s201_s16, %s4115_s17, %s4115_s17, %s4116_s26  }
  0x33   : > { %p3213_p4 = scmp.ge.s32.totalorder %s4112_s21, 1  ;;  %p240_p9 = scmp.lt.s32.totalorder %s4112_s21, 3 }
  0x34   : > { %s3210_s28 = sshll.u32 %s4222_s7, 6  ;;  %s3303_s9 = sshll.u32 %s4112_s21, 10 }
  0x35   : > { %p4270_p11 = pnand %p3213_p4, %p240_p9  ;;  %s225_s10 = scalar_lea.vmem [#allocation5], %s3210_s28 }
  0x36   : > { %s232_s11 = sshll.u32 %s225_s10, 4  ;;  %s4278_s23 = scalar_lea.hbm %s4798_s2, %s3303_s9  ;;  %s4280_s11 = int_to_ptr.vmem [resolvable:$true] %s232_s11 }
  0x37   : > { %s222_s12 = scalar_lea.sflag [#allocation6], %s4222_s7  ;;  %s3952_s14 = scalar_lea.hbm %s4278_s23, 1024 }
  0x38   : > { %p3953_p12 = scmp.ne.s32.totalorder %s4278_s23, %s3952_s14  ;;  %s3957_s26 = scalar_lea.hbm %s4798_s2, 2048 }
  0x39   : > { %p3958_p0 = scmp.lt.u32.totalorder %s4278_s23, %s4798_s2  ;;  %p3959_p2 = scmp.lt.u32.totalorder %s3957_s26, %s3952_s14 }
  0x3a   : > { %p3955_p3 = pnand %p3953_p12, %p3924_p1  ;;  %p3961_p7 = scmp.lt.u32.totalorder %s3952_s14, %s4278_s23 }
  0x3b   : > { %p3960_p5 = por %p3959_p2, %p3958_p0 }
  0x3c   : > { %p3956_p10 = pneg %p3955_p3 }
  0x3d   : > { %p3962_p8 = por %p3961_p7, %p3960_p5 }
  0x3f   : > { %p3963_p4 = pnand %p3962_p8, %p3956_p10 }
  0x41   : > { %3966 = shalt.err (!%p3963_p4)
}
  0x42   : > { %s3967_s10 = scalar_lea.vmem %s4280_s11, 1024  ;;  %s4117_s13 = smov [#allocation5]  }
  0x43   : > { %p3968_p9 = scmp.ne.s32.totalorder %s4280_s11, %s3967_s10  ;;  %s3972_s25 = sshll.u32 %s4117_s13, 4  ;;  %s3973_s25 = int_to_ptr.vmem [resolvable:$false] %s3972_s25 }
  0x44   : > { %s3974_s16 = scalar_lea.vmem %s3973_s25, 2048  ;;  %p3975_p6 = scmp.lt.s32.totalorder %s4280_s11, %s3973_s25 }
  0x45   : > { %p3970_p12 = pnand %p3968_p9, %p3924_p1  ;;  %p3976_p0 = scmp.lt.s32.totalorder %s3974_s16, %s3967_s10 }
  0x47   : > { %p3971_p3 = pneg %p3970_p12  ;;  %p3977_p2 = por %p3976_p0, %p3975_p6 }
  0x49   : > { %p3978_p5 = pnand %p3977_p2, %p3971_p3 }
  0x4b   : > { %3981 = shalt.err (!%p3978_p5)
}
  0x4c   : > { %s4118_s14 = smov 128   ;;  %s4119_s17 = smov 8  }
  0x4d   : > { %3737 = dma.hbm_to_vmem [thread:$0]  (!%p4233_p13), %s4278_s23, 1024, %s4280_s11, %s222_s12, %s4118_s14, %s4118_s14, %s4119_s17  }
  0x4e   : > { %244 = sbr.rel (%p4270_p11) target bundleno = 2234 (0x8ba), region = 32  ;;  %s4311_s26 = sand.u32 (!%p4270_p11), 1, %s4104_s19  }
  0x4f   : > { %s3214_s28 = sshll.u32 (!%p4270_p11), %s4311_s26, 7  ;;  %s247_s9 = scalar_lea.sflag (!%p4270_p11), [#allocation3], %s4311_s26 }
  0x50   : > { %s4315_s10 = scalar_lea.vmem (!%p4270_p11), [#allocation2], %s3214_s28  ;;  %p4813_p6 = scmp.ne.s32.totalorder (!%p4270_p11), %s4808_s29, 0 }
  0x55   : > { %4083 = dma.done.wait (%p4813_p6), %s247_s9, 2048  }
  0x56   : > { %4085 = vsyncadd (%p4813_p6), %s247_s9, 4294965248  ;;  %s3215_s23 = sshll.u32 %s4311_s26, 6  ;;  %s256_s7 = scalar_lea.sflag [#allocation6], %s4311_s26 }
  0x57   : > { %s259_s15 = scalar_lea.vmem [#allocation5], %s3215_s23 }
  0x58   : > { %4087 = dma.done.wait (%p4813_p6), %s256_s7, 1024  }
  0x59   : > { %4089 = vsyncadd (%p4813_p6), %s256_s7, 4294966272  ;;  %v4120_v0 = vmov 0.0|0.0   ;;  %vm4121_vm0 = vmmov 0   ;;  %v4122_v1 = vmov 0.0   ;;  %p4814_p13 = scmp.eq.s32.totalorder %s4180_s22, 0  ;;  %v4123_v2 = vmov 0  }
  0x5a   : > { %3625 = vmatprep.subr.bf16.mxu0 %v4120_v0  ;;  %3628 = vmatprep.subr.bf16.mxu1 %v4120_v0  ;;  %v302_v4 = vld [vmem:[%s259_s15] sm:$0xff]  ;;  %v303_v5 = vld [vmem:[%s259_s15 + $0x8] sm:$0xff]  ;;  %v3219_v6 = vld [vmem:[%s259_s15 + $0x10] sm:$0xff]  ;;  %s4817_s0 = sld [smem:[#allocation15_spill]]  ;;  %s3216_s17 = sshll.u32 %s4311_s26, 5  ;;  %vm644_vm6 = vcmask 125952  }
  0x5b   : > { %3405 = vmatprep.mubr.msk.f32.mxu0 %vm4121_vm0, %v4122_v1  ;;  %3412 = vmatprep.mubr.msk.f32.mxu1 %vm4121_vm0, %v4122_v1  ;;  %s4335_s8 = scalar_select %p4814_p13, 0, 7  ;;  %v4349_v8 = vpack.c.bf16 %v303_v5, %v302_v4  ;;  %v3220_v9 = vld [vmem:[%s259_s15 + $0x18] sm:$0xff]  ;;  %v3221_v10 = vld [vmem:[%s259_s15 + $0x20] sm:$0xff]  ;;  %v3222_v11 = vld [vmem:[%s259_s15 + $0x28] sm:$0xff]  ;;  %vm321_vm7 = vcmask 130048  }
  0x5c   : > { %3792 = vset.pattern.permute.xlu0 %v4123_v2  ;;  %p4815_p1 = pmov %p4814_p13  ;;  %3793 = vset.pattern.permute.xlu1 %v4123_v2  ;;  %v4351_v12 = vpack.c.bf16 %v3220_v9, %v3219_v6  ;;  %v3223_v13 = vld [vmem:[%s259_s15 + $0x30] sm:$0xff]  ;;  %v3224_v14 = vld [vmem:[%s259_s15 + $0x38] sm:$0xff]  ;;  %v4359_v16 = vpack.c.bf16 %v3222_v11, %v3221_v10  ;;  %s4406_s9 = scalar_lea.vmem [#allocation7], %s3216_s17 }
  0x5d   : > { %v633_v3 = vstv %s4335_s8  ;;  %3627 = vmatpush3.bf16.msra.mxu0 %v4349_v8  ;;  %v4365_v17 = vpack.c.bf16 %v3224_v14, %v3223_v13  ;;  %s3225_s16 = sshll.u32 %s4335_s8, 4  ;;  %s3229_s28 = sshll.u32 %s4335_s8, 2 }
  0x5e   : > { %s4340_s29 = scalar_select %p4815_p1, 1, 6  ;;  %3630 = vmatpush3.bf16.msra.mxu1 %v4351_v12  ;;  %3631 = vmatprep.subr.bf16.mxu0 %v4120_v0 }
  0x5f   : > { %p4816_p11 = pmov %p4815_p1  ;;  %p4818_p10 = pmov %p4815_p1  ;;  %3634 = vmatprep.subr.bf16.mxu1 %v4120_v0 }
  0x60   : > { %v964_v7 = vstv %s4340_s29  ;;  %v4356_v15 = vld [vmem:[%s4817_s0] sm:$0xf]  ;;  %3406 = vmatmul.mubr.f32.vlgmr.msra.gmra.mrb[0].mxu0 %v4122_v1  ;;  %s316_s14 = scalar_lea.vmem %s4315_s10, %s3225_s16 [#allocation2]  ;;  %s643_s23 = scalar_lea.vmem %s4406_s9, %s3229_s28 [#allocation7] }
  0x61   : > { %s4347_s11 = scalar_select %p4816_p11, 4, 3  ;;  %vm634_vm1 = vcmp.lt.s32.totalorder %v633_v3, %v4356_v15  ;;  %vm965_vm2 = vcmp.lt.s32.totalorder %v964_v7, %v4356_v15  ;;  %3413 = vmatmul.mubr.f32.vlgmr.msra.gmra.mrb[0].mxu1 %v4122_v1  ;;  %3633 = vmatpush3.bf16.msra.mxu0 %v4359_v16  ;;  %v317_v24 = vld [vmem:[%s316_s14] sm:$0xf]  ;;  %v318_v25 = vld [vmem:[%s316_s14 + $0x4] sm:$0xf] }
  0x62   : > { %v635_v18 = vsel %vm634_vm1, 1, %v4123_v2  ;;  %s4371_s25 = scalar_select %p4818_p10, 6, 1  ;;  %v966_v20 = vsel %vm965_vm2, 1, %v4123_v2  ;;  %3636 = vmatpush3.bf16.msra.mxu1 %v4365_v17  ;;  %3419 = vmatprep.mubr.msk.f32.mxu0 %vm4121_vm0, %v4122_v1  ;;  %v319_v32 = vld [vmem:[%s316_s14 + $0x8] sm:$0xf] }
  0x63   : > { %v1957_v19 = vstv %s4347_s11  ;;  %637 = vperm.xlu0 %3792, %v635_v18   ;;  %3426 = vmatprep.mubr.msk.f32.mxu1 %vm4121_vm0, %v4122_v1  ;;  %v320_v34 = vld [vmem:[%s316_s14 + $0xc] sm:$0xf]  ;;  %p4819_p7 = pmov %p4815_p1  ;;  %p4820_p8 = pmov %p4815_p1 }
  0x64   : > { %vm1958_vm3 = vcmp.lt.s32.totalorder %v1957_v19, %v4356_v15  ;;  %v2619_v21 = vstv %s4371_s25  ;;  %3420 = vmatmul.mubr.f32.vlgmr.msra.gmra.mrb[2].mxu0 %v4122_v1  ;;  %3637 = vmatprep.subr.bf16.mxu0 %v4120_v0  ;;  %p4821_p4 = pmov %p4815_p1  ;;  %p4822_p9 = pmov %p4815_p1 }
  0x65   : > { %v1959_v22 = vsel %vm1958_vm3, 1, %v4123_v2  ;;  %3427 = vmatmul.mubr.f32.vlgmr.msra.gmra.mrb[2].mxu1 %v4122_v1  ;;  %vm2620_vm4 = vcmp.lt.s32.totalorder %v2619_v21, %v4356_v15  ;;  %3640 = vmatprep.subr.bf16.mxu1 %v4120_v0  ;;  %s4439_s7 = scalar_select %p4819_p7, 2, 5 }
  0x66   : > { %3639 = vmatpush3.bf16.msra.mxu0 %v4349_v8  ;;  %3642 = vmatpush3.bf16.msra.mxu1 %v4351_v12  ;;  %v2621_v23 = vsel %vm2620_vm4, 1, %v4123_v2  ;;  %s4443_s15 = scalar_select %p4820_p8, 3, 4 }
  0x67   : > { %968 = vperm.xlu0 %3792, %v966_v20   ;;  %3433 = vmatprep.mubr.msk.f32.mxu0 %vm4121_vm0, %v4122_v1  ;;  %v1295_v61 = vstv %s4439_s7  ;;  %s4452_s8 = scalar_select %p4821_p4, 5, 2 }
  0x68   : > { %3440 = vmatprep.mubr.msk.f32.mxu1 %vm4121_vm0, %v4122_v1  ;;  %3643 = vmatprep.subr.bf16.mxu0 %v4120_v0  ;;  %vm1296_vm8 = vcmp.lt.s32.totalorder %v1295_v61, %v4356_v15  ;;  %v1626_v62 = vstv %s4443_s15  ;;  %s4457_s12 = scalar_select %p4822_p9, 7, 0 }
  0x69   : > { %3646 = vmatprep.subr.bf16.mxu1 %v4120_v0  ;;  %v1297_v63 = vsel %vm1296_vm8, 1, %v4123_v2  ;;  %vm1627_vm9 = vcmp.lt.s32.totalorder %v1626_v62, %v4356_v15  ;;  %v2288_v4 = vstv %s4452_s8  ;;  %s3230_s13 = sshll.u32 %s4340_s29, 4  ;;  %s3238_s14 = sshll.u32 %s4340_s29, 2 }
  0x6a   : > { %1299 = vperm.xlu1 %3793, %v1297_v63   ;;  %v1628_v3 = vsel %vm1627_vm9, 1, %v4123_v2  ;;  %vm2289_vm10 = vcmp.lt.s32.totalorder %v2288_v4, %v4356_v15  ;;  %v2950_v5 = vstv %s4457_s12  ;;  %s648_s16 = scalar_lea.vmem %s4315_s10, %s3230_s13 [#allocation2]  ;;  %s975_s17 = scalar_lea.vmem %s4406_s9, %s3238_s14 [#allocation7] }
  0x6b   : > { %1961 = vperm.xlu0 %3792, %v1959_v22   ;;  %v2290_v6 = vsel %vm2289_vm10, 1, %v4123_v2  ;;  %vm2951_vm11 = vcmp.lt.s32.totalorder %v2950_v5, %v4356_v15  ;;  %v649_v9 = vld [vmem:[%s648_s16] sm:$0xf]  ;;  %v650_v10 = vld [vmem:[%s648_s16 + $0x4] sm:$0xf]  ;;  %s3239_s29 = sshll.u32 %s4439_s7, 4 }
  0x6c   : > { %v2952_v7 = vsel %vm2951_vm11, 1, %v4123_v2  ;;  %v652_v15 = vld [vmem:[%s648_s16 + $0xc] sm:$0xf]  ;;  %s979_s28 = scalar_lea.vmem %s4315_s10, %s3239_s29 [#allocation2]  ;;  %s3256_s14 = sshll.u32 %s4443_s15, 2 }
  0x6d   : > { %p4823_p3 = scmp.ne.s32.totalorder %s4809_s30, 0 }
  0x6e   : > { %1630 = vperm.xlu1 %3793, %v1628_v3  }
  0x6f   : > { %2623 = vperm.xlu0 %3792, %v2621_v23  }
  0x72   : > { %2292 = vperm.xlu1 %3793, %v2290_v6  }
  0x76   : > { %2954 = vperm.xlu1 %3793, %v2952_v7  }
  0xe2   : > { %v638_v51 = vpop.permute.xlu0 %637 }
  0xe3   : > { %vm639_vm5 = vcmp.eq.s32.totalorder %v638_v51, 1 }
 0x133   : > { %v391_v26 = vpop.f32.mrb[0].mxu0 }
 0x134   : > { %v395_v27 = vadd.f32 %v391_v26, %v317_v24  ;;  %v468_v28 = vpop.f32.mrb[0].mxu1  ;;  %v3407_v29 = vpop.f32.mrb[1].mxu0 }
 0x135   : > { %v472_v30 = vadd.f32 %v468_v28, %v318_v25  ;;  %v3414_v31 = vpop.f32.mrb[1].mxu1 }
 0x136   : > { %v3226_v33 = vmul.f32 -1.442695, %v395_v27  ;;  %v651_v27 = vld [vmem:[%s648_s16 + $0x8] sm:$0xf] }
 0x137   : > { %v3227_v35 = vmul.f32 -1.442695, %v472_v30  ;;  %v545_v36 = vpop.f32.mrb[2].mxu0 }
 0x138   : > { %3794 = vpow2.f32 %v3226_v33  ;;  %v549_v37 = vadd.f32 %v545_v36, %v319_v32  ;;  %v617_v38 = vpop.f32.mrb[2].mxu1  ;;  %v3421_v39 = vpop.f32.mrb[3].mxu0 }
 0x139   : > { %3796 = vpow2.f32 %v3227_v35  ;;  %v621_v40 = vadd.f32 %v617_v38, %v320_v34  ;;  %v3428_v41 = vpop.f32.mrb[3].mxu1 }
 0x13a   : > { %v969_v41 = vpop.permute.xlu0 %968 }
 0x13b   : > { %v3228_v42 = vmul.f32 -1.442695, %v621_v40  ;;  %vm970_vm12 = vcmp.eq.s32.totalorder %v969_v41, 1 }
 0x13d   : > { %3798 = vpow2.f32 %v3228_v42 }
 0x13e   : > { %3800 = vtanh.f32 %v549_v37 }
 0x142   : > { %v3795_v43 = vpop.eup %3794 }
 0x143   : > { %v3797_v44 = vpop.eup %3796  ;;  %v399_v45 = vadd.f32 1.0, %v3795_v43 }
 0x144   : > { %v476_v46 = vadd.f32 1.0, %v3797_v44 }
 0x145   : > { %3802 = vrcp.f32 %v399_v45 }
 0x146   : > { %3804 = vrcp.f32 %v476_v46 }
 0x147   : > { %v3799_v47 = vpop.eup %3798 }
 0x148   : > { %v3801_v48 = vpop.eup %3800  ;;  %v625_v50 = vadd.f32 1.0, %v3799_v47 }
 0x14a   : > { %3806 = vrcp.f32 %v625_v50  ;;  %v981_v50 = vld [vmem:[%s979_s28 + $0x4] sm:$0xf] }
 0x14f   : > { %v3803_v49 = vpop.eup %3802 }
 0x150   : > { %v3805_v52 = vpop.eup %3804  ;;  %v629_v53 = vmul.f32 %v3803_v49, %v3801_v48  ;;  %v980_v49 = vld [vmem:[%s979_s28] sm:$0xf] }
 0x151   : > { %v628_v54 = vmul.f32 0.0, %v3805_v52 }
 0x153   : > { %v630_v55 = vadd.f32 %v629_v53, %v628_v54 }
 0x154   : > { %v3807_v57 = vpop.eup %3806 }
 0x155   : > { %3808 = vtanh.f32 %v630_v55  ;;  %v4402_v56 = vsel %vm639_vm5, %v630_v55, 0.0 }
 0x15f   : > { %v3809_v58 = vpop.eup %3808 }
 0x160   : > { %v632_v59 = vmul.f32 %v3809_v58, %v3807_v57  ;;  %v982_v57 = vld [vmem:[%s979_s28 + $0x8] sm:$0xf]  ;;  %v983_v58 = vld [vmem:[%s979_s28 + $0xc] sm:$0xf]  ;;  %s3265_s28 = sshll.u32 %s4347_s11, 2 }
 0x162   : > { %v4409_v60 = vsel %vm639_vm5, %v632_v59, 0.0 }
 0x163   : > { %645 = vst.msk [vmem:[%s643_s23] sm:$0xf] %vm644_vm6, %v4409_v60  ;;  %3434 = vmatmul.mubr.msk.f32.vlgmr.msra.gmra.mrb[4].mxu0 %vm321_vm7, %v4409_v60  ;;  %3441 = vmatmul.mubr.msk.f32.vlgmr.msra.gmra.mrb[4].mxu1 %vm321_vm7, %v4409_v60  ;;  %s3247_s23 = sshll.u32 %s4439_s7, 2  ;;  %s3248_s7 = sshll.u32 %s4443_s15, 4 }
 0x164   : > { %3645 = vmatpush3.bf16.msra.mxu0 %v4359_v16  ;;  %3648 = vmatpush3.bf16.msra.mxu1 %v4365_v17  ;;  %s1306_s13 = scalar_lea.vmem %s4406_s9, %s3247_s23 [#allocation7]  ;;  %s1310_s16 = scalar_lea.vmem %s4315_s10, %s3248_s7 [#allocation2] }
 0x165   : > { %3447 = vmatprep.mubr.msk.f32.mxu0 %vm4121_vm0, %v4122_v1  ;;  %3454 = vmatprep.mubr.msk.f32.mxu1 %vm4121_vm0, %v4122_v1  ;;  %v1314_v41 = vld [vmem:[%s1310_s16 + $0xc] sm:$0xf]  ;;  %s3257_s15 = sshll.u32 %s4347_s11, 4  ;;  %s1968_s23 = scalar_lea.vmem %s4406_s9, %s3265_s28 [#allocation7] }
 0x166   : > { %3649 = vmatprep.subr.bf16.mxu0 %v4120_v0  ;;  %3652 = vmatprep.subr.bf16.mxu1 %v4120_v0  ;;  %s1641_s29 = scalar_lea.vmem %s4315_s10, %s3257_s15 [#allocation2]  ;;  %s3266_s11 = sshll.u32 %s4452_s8, 4 }
 0x167   : > { %3448 = vmatmul.mubr.msk.f32.vlgmr.msra.gmra.mrb[6].mxu0 %vm321_vm7, %v4409_v60  ;;  %3455 = vmatmul.mubr.msk.f32.vlgmr.msra.gmra.mrb[6].mxu1 %vm321_vm7, %v4409_v60  ;;  %s3274_s7 = sshll.u32 %s4452_s8, 2  ;;  %s3275_s8 = sshll.u32 %s4371_s25, 4 }
 0x168   : > { %3651 = vmatpush3.bf16.msra.mxu0 %v4349_v8  ;;  %3654 = vmatpush3.bf16.msra.mxu1 %v4351_v12 }
 0x169   : > { %3461 = vmatprep.mubr.msk.f32.mxu0 %vm4121_vm0, %v4122_v1  ;;  %3468 = vmatprep.mubr.msk.f32.mxu1 %vm4121_vm0, %v4122_v1 }
 0x16a   : > { %3655 = vmatprep.subr.bf16.mxu0 %v4120_v0  ;;  %3658 = vmatprep.subr.bf16.mxu1 %v4120_v0 }
 0x236   : > { %v722_v11 = vpop.f32.mrb[4].mxu0  ;;  %v799_v13 = vpop.f32.mrb[4].mxu1 }
 0x237   : > { %v726_v14 = vadd.f32 %v722_v11, %v649_v9  ;;  %v803_v18 = vadd.f32 %v799_v13, %v650_v10  ;;  %v3435_v19 = vpop.f32.mrb[5].mxu0  ;;  %v3442_v20 = vpop.f32.mrb[5].mxu1 }
 0x238   : > { %v1300_v19 = vpop.permute.xlu1 %1299 }
 0x239   : > { %v3232_v21 = vmul.f32 -1.442695, %v726_v14  ;;  %v3234_v22 = vmul.f32 -1.442695, %v803_v18  ;;  %vm1301_vm13 = vcmp.eq.s32.totalorder %v1300_v19, 1 }
 0x23a   : > { %v876_v23 = vpop.f32.mrb[6].mxu0  ;;  %v948_v24 = vpop.f32.mrb[6].mxu1 }
 0x23b   : > { %3810 = vpow2.f32 %v3232_v21  ;;  %v3449_v25 = vpop.f32.mrb[7].mxu0  ;;  %v3456_v26 = vpop.f32.mrb[7].mxu1  ;;  %v952_v2 = vadd.f32 %v948_v24, %v652_v15  ;;  %v880_v29 = vadd.f32 %v876_v23, %v651_v27 }
 0x23c   : > { %3812 = vpow2.f32 %v3234_v22 }
 0x23d   : > { %v3237_v28 = vmul.f32 -1.442695, %v952_v2 }
 0x23f   : > { %3814 = vpow2.f32 %v3237_v28 }
 0x240   : > { %3816 = vtanh.f32 %v880_v29  ;;  %v1311_v29 = vld [vmem:[%s1310_s16] sm:$0xf] }
 0x245   : > { %v3811_v30 = vpop.eup %3810 }
 0x246   : > { %v3813_v31 = vpop.eup %3812  ;;  %v730_v32 = vadd.f32 1.0, %v3811_v30  ;;  %v1312_v30 = vld [vmem:[%s1310_s16 + $0x4] sm:$0xf] }
 0x247   : > { %v807_v33 = vadd.f32 1.0, %v3813_v31 }
 0x248   : > { %3818 = vrcp.f32 %v730_v32 }
 0x249   : > { %3820 = vrcp.f32 %v807_v33  ;;  %v3815_v34 = vpop.eup %3814 }
 0x24a   : > { %v3817_v35 = vpop.eup %3816  ;;  %v956_v39 = vadd.f32 1.0, %v3815_v34 }
 0x24c   : > { %3822 = vrcp.f32 %v956_v39 }
 0x252   : > { %v3819_v36 = vpop.eup %3818 }
 0x253   : > { %v3821_v37 = vpop.eup %3820  ;;  %v960_v38 = vmul.f32 %v3819_v36, %v3817_v35 }
 0x254   : > { %v959_v40 = vmul.f32 %v3821_v37, %v4402_v56 }
 0x256   : > { %v961_v42 = vadd.f32 %v960_v38, %v959_v40  ;;  %v3823_v44 = vpop.eup %3822 }
 0x258   : > { %3824 = vtanh.f32 %v961_v42  ;;  %v4469_v43 = vsel %vm970_vm12, %v961_v42, %v4402_v56 }
 0x262   : > { %v3825_v45 = vpop.eup %3824 }
 0x263   : > { %v963_v46 = vmul.f32 %v3825_v45, %v3823_v44  ;;  %v1313_v45 = vld [vmem:[%s1310_s16 + $0x8] sm:$0xf]  ;;  %s2299_s16 = scalar_lea.vmem %s4406_s9, %s3274_s7 [#allocation7] }
 0x265   : > { %v4474_v47 = vsel %vm970_vm12, %v963_v46, %v4409_v60  ;;  %v973_v48 = vsel %vm970_vm12, %v963_v46, 0.0 }
 0x266   : > { %976 = vst.msk [vmem:[%s975_s17] sm:$0xf] %vm644_vm6, %v973_v48  ;;  %3462 = vmatmul.mubr.msk.f32.vlgmr.msra.gmra.mrb[8].mxu0 %vm321_vm7, %v4474_v47  ;;  %3469 = vmatmul.mubr.msk.f32.vlgmr.msra.gmra.mrb[8].mxu1 %vm321_vm7, %v4474_v47  ;;  %s1637_s17 = scalar_lea.vmem %s4406_s9, %s3256_s14 [#allocation7]  ;;  %s2303_s14 = scalar_lea.vmem %s4315_s10, %s3275_s8 [#allocation2] }
 0x267   : > { %3657 = vmatpush3.bf16.msra.mxu0 %v4359_v16  ;;  %3660 = vmatpush3.bf16.msra.mxu1 %v4365_v17 }
 0x268   : > { %3475 = vmatprep.mubr.msk.f32.mxu0 %vm4121_vm0, %v4122_v1  ;;  %3482 = vmatprep.mubr.msk.f32.mxu1 %vm4121_vm0, %v4122_v1 }
 0x269   : > { %3661 = vmatprep.subr.bf16.mxu0 %v4120_v0  ;;  %3664 = vmatprep.subr.bf16.mxu1 %v4120_v0 }
 0x26a   : > { %3476 = vmatmul.mubr.msk.f32.vlgmr.msra.gmra.mrb[10].mxu0 %vm321_vm7, %v4474_v47  ;;  %3483 = vmatmul.mubr.msk.f32.vlgmr.msra.gmra.mrb[10].mxu1 %vm321_vm7, %v4474_v47 }
 0x26b   : > { %3663 = vmatpush3.bf16.msra.mxu0 %v4349_v8  ;;  %3666 = vmatpush3.bf16.msra.mxu1 %v4351_v12 }
 0x26c   : > { %3489 = vmatprep.mubr.msk.f32.mxu0 %vm4121_vm0, %v4122_v1  ;;  %3496 = vmatprep.mubr.msk.f32.mxu1 %vm4121_vm0, %v4122_v1 }
 0x26d   : > { %3667 = vmatprep.subr.bf16.mxu0 %v4120_v0  ;;  %3670 = vmatprep.subr.bf16.mxu1 %v4120_v0 }
 0x339   : > { %v1053_v51 = vpop.f32.mrb[8].mxu0  ;;  %v1130_v52 = vpop.f32.mrb[8].mxu1 }
 0x33a   : > { %v1057_v53 = vadd.f32 %v1053_v51, %v980_v49  ;;  %v1134_v54 = vadd.f32 %v1130_v52, %v981_v50  ;;  %v3463_v55 = vpop.f32.mrb[9].mxu0  ;;  %v3470_v56 = vpop.f32.mrb[9].mxu1 }
 0x33c   : > { %v3241_v59 = vmul.f32 -1.442695, %v1057_v53  ;;  %v3243_v60 = vmul.f32 -1.442695, %v1134_v54 }
 0x33d   : > { %v1207_v61 = vpop.f32.mrb[10].mxu0  ;;  %v1279_v62 = vpop.f32.mrb[10].mxu1 }
 0x33e   : > { %3826 = vpow2.f32 %v3241_v59  ;;  %v1211_v63 = vadd.f32 %v1207_v61, %v982_v57  ;;  %v1283_v3 = vadd.f32 %v1279_v62, %v983_v58  ;;  %v3477_v4 = vpop.f32.mrb[11].mxu0  ;;  %v3484_v5 = vpop.f32.mrb[11].mxu1 }
 0x33f   : > { %3828 = vpow2.f32 %v3243_v60  ;;  %v1631_v59 = vpop.permute.xlu1 %1630 }
 0x340   : > { %v3246_v6 = vmul.f32 -1.442695, %v1283_v3  ;;  %vm1632_vm14 = vcmp.eq.s32.totalorder %v1631_v59, 1 }
 0x342   : > { %3830 = vpow2.f32 %v3246_v6  ;;  %v1642_v6 = vld [vmem:[%s1641_s29] sm:$0xf] }
 0x343   : > { %3832 = vtanh.f32 %v1211_v63 }
 0x348   : > { %v3827_v7 = vpop.eup %3826 }
 0x349   : > { %v3829_v9 = vpop.eup %3828  ;;  %v1061_v10 = vadd.f32 1.0, %v3827_v7  ;;  %v1643_v7 = vld [vmem:[%s1641_s29 + $0x4] sm:$0xf] }
 0x34a   : > { %v1138_v11 = vadd.f32 1.0, %v3829_v9 }
 0x34b   : > { %3834 = vrcp.f32 %v1061_v10 }
 0x34c   : > { %3836 = vrcp.f32 %v1138_v11  ;;  %v3831_v13 = vpop.eup %3830 }
 0x34d   : > { %v3833_v14 = vpop.eup %3832  ;;  %v1287_v21 = vadd.f32 1.0, %v3831_v13 }
 0x34f   : > { %3838 = vrcp.f32 %v1287_v21 }
 0x355   : > { %v3835_v18 = vpop.eup %3834 }
 0x356   : > { %v3837_v20 = vpop.eup %3836  ;;  %v1291_v22 = vmul.f32 %v3835_v18, %v3833_v14 }
 0x357   : > { %v1290_v23 = vmul.f32 %v3837_v20, %v4469_v43 }
 0x359   : > { %v1292_v24 = vadd.f32 %v1291_v22, %v1290_v23  ;;  %v3839_v25 = vpop.eup %3838  ;;  %v1645_v23 = vld [vmem:[%s1641_s29 + $0xc] sm:$0xf] }
 0x35b   : > { %3840 = vtanh.f32 %v1292_v24  ;;  %v4505_v15 = vsel %vm1301_vm13, %v1292_v24, %v4469_v43 }
 0x365   : > { %v3841_v26 = vpop.eup %3840 }
 0x366   : > { %v1294_v2 = vmul.f32 %v3841_v26, %v3839_v25  ;;  %v1644_v26 = vld [vmem:[%s1641_s29 + $0x8] sm:$0xf] }
 0x368   : > { %v4510_v27 = vsel %vm1301_vm13, %v1294_v2, %v4474_v47  ;;  %v1304_v28 = vsel %vm1301_vm13, %v1294_v2, 0.0 }
 0x369   : > { %1307 = vst.msk [vmem:[%s1306_s13] sm:$0xf] %vm644_vm6, %v1304_v28  ;;  %3490 = vmatmul.mubr.msk.f32.vlgmr.msra.gmra.mrb[12].mxu0 %vm321_vm7, %v4510_v27  ;;  %3497 = vmatmul.mubr.msk.f32.vlgmr.msra.gmra.mrb[12].mxu1 %vm321_vm7, %v4510_v27  ;;  %s1972_s13 = scalar_lea.vmem %s4315_s10, %s3266_s11 [#allocation2]  ;;  %s2970_s11 = sand.u32 1, %s4180_s22  }
 0x36a   : > { %3669 = vmatpush3.bf16.msra.mxu0 %v4359_v16  ;;  %3672 = vmatpush3.bf16.msra.mxu1 %v4365_v17  ;;  %v1976_v59 = vld [vmem:[%s1972_s13 + $0xc] sm:$0xf]  ;;  %s4706_s0 = scalar_lea.sflag [#allocation9], %s2970_s11 }
 0x36b   : > { %3503 = vmatprep.mubr.msk.f32.mxu0 %vm4121_vm0, %v4122_v1  ;;  %3510 = vmatprep.mubr.msk.f32.mxu1 %vm4121_vm0, %v4122_v1 }
 0x36c   : > { %3673 = vmatprep.subr.bf16.mxu0 %v4120_v0  ;;  %3676 = vmatprep.subr.bf16.mxu1 %v4120_v0 }
 0x36d   : > { %3504 = vmatmul.mubr.msk.f32.vlgmr.msra.gmra.mrb[14].mxu0 %vm321_vm7, %v4510_v27  ;;  %3511 = vmatmul.mubr.msk.f32.vlgmr.msra.gmra.mrb[14].mxu1 %vm321_vm7, %v4510_v27 }
 0x36e   : > { %3675 = vmatpush3.bf16.msra.mxu0 %v4349_v8  ;;  %3678 = vmatpush3.bf16.msra.mxu1 %v4351_v12 }
 0x36f   : > { %3517 = vmatprep.mubr.msk.f32.mxu0 %vm4121_vm0, %v4122_v1  ;;  %3524 = vmatprep.mubr.msk.f32.mxu1 %vm4121_vm0, %v4122_v1 }
 0x370   : > { %3679 = vmatprep.subr.bf16.mxu0 %v4120_v0  ;;  %3682 = vmatprep.subr.bf16.mxu1 %v4120_v0 }
 0x43c   : > { %v1384_v31 = vpop.f32.mrb[12].mxu0  ;;  %v1461_v32 = vpop.f32.mrb[12].mxu1 }
 0x43d   : > { %v1388_v33 = vadd.f32 %v1384_v31, %v1311_v29  ;;  %v1465_v34 = vadd.f32 %v1461_v32, %v1312_v30  ;;  %v3491_v35 = vpop.f32.mrb[13].mxu0  ;;  %v3498_v36 = vpop.f32.mrb[13].mxu1 }
 0x43f   : > { %v3250_v37 = vmul.f32 -1.442695, %v1388_v33  ;;  %v3252_v38 = vmul.f32 -1.442695, %v1465_v34 }
 0x440   : > { %v1538_v39 = vpop.f32.mrb[14].mxu0  ;;  %v1610_v40 = vpop.f32.mrb[14].mxu1 }
 0x441   : > { %3842 = vpow2.f32 %v3250_v37  ;;  %v3505_v42 = vpop.f32.mrb[15].mxu0  ;;  %v3512_v43 = vpop.f32.mrb[15].mxu1  ;;  %v1614_v44 = vadd.f32 %v1610_v40, %v1314_v41  ;;  %v1542_v47 = vadd.f32 %v1538_v39, %v1313_v45 }
 0x442   : > { %3844 = vpow2.f32 %v3252_v38  ;;  %v1962_v39 = vpop.permute.xlu0 %1961 }
 0x443   : > { %v3255_v46 = vmul.f32 -1.442695, %v1614_v44  ;;  %vm1963_vm15 = vcmp.eq.s32.totalorder %v1962_v39, 1 }
 0x445   : > { %3846 = vpow2.f32 %v3255_v46 }
 0x446   : > { %3848 = vtanh.f32 %v1542_v47  ;;  %v1973_v47 = vld [vmem:[%s1972_s13] sm:$0xf] }
 0x44b   : > { %v3843_v48 = vpop.eup %3842 }
 0x44c   : > { %v3845_v49 = vpop.eup %3844  ;;  %v1392_v50 = vadd.f32 1.0, %v3843_v48  ;;  %v1974_v48 = vld [vmem:[%s1972_s13 + $0x4] sm:$0xf] }
 0x44d   : > { %v1469_v51 = vadd.f32 1.0, %v3845_v49 }
 0x44e   : > { %3850 = vrcp.f32 %v1392_v50 }
 0x44f   : > { %3852 = vrcp.f32 %v1469_v51  ;;  %v3847_v52 = vpop.eup %3846 }
 0x450   : > { %v3849_v53 = vpop.eup %3848  ;;  %v1618_v57 = vadd.f32 1.0, %v3847_v52 }
 0x452   : > { %3854 = vrcp.f32 %v1618_v57 }
 0x458   : > { %v3851_v54 = vpop.eup %3850 }
 0x459   : > { %v3853_v55 = vpop.eup %3852  ;;  %v1622_v56 = vmul.f32 %v3851_v54, %v3849_v53 }
 0x45a   : > { %v1621_v58 = vmul.f32 %v3853_v55, %v4505_v15 }
 0x45c   : > { %v1623_v60 = vadd.f32 %v1622_v56, %v1621_v58  ;;  %v3855_v62 = vpop.eup %3854 }
 0x45e   : > { %3856 = vtanh.f32 %v1623_v60  ;;  %v4541_v61 = vsel %vm1632_vm14, %v1623_v60, %v4505_v15 }
 0x468   : > { %v3857_v63 = vpop.eup %3856 }
 0x469   : > { %v1625_v3 = vmul.f32 %v3857_v63, %v3855_v62  ;;  %v1975_v63 = vld [vmem:[%s1972_s13 + $0x8] sm:$0xf]  ;;  %s3298_s13 = sshll.u32 %s4180_s22, 6 }
 0x46b   : > { %v4546_v4 = vsel %vm1632_vm14, %v1625_v3, %v4510_v27  ;;  %v1635_v5 = vsel %vm1632_vm14, %v1625_v3, 0.0 }
 0x46c   : > { %1638 = vst.msk [vmem:[%s1637_s17] sm:$0xf] %vm644_vm6, %v1635_v5  ;;  %3518 = vmatmul.mubr.msk.f32.vlgmr.msra.gmra.mrb[16].mxu0 %vm321_vm7, %v4546_v4  ;;  %3525 = vmatmul.mubr.msk.f32.vlgmr.msra.gmra.mrb[16].mxu1 %vm321_vm7, %v4546_v4  ;;  %s3283_s17 = sshll.u32 %s4371_s25, 2  ;;  %s3284_s25 = sshll.u32 %s4457_s12, 4 }
 0x46d   : > { %3681 = vmatpush3.bf16.msra.mxu0 %v4359_v16  ;;  %3684 = vmatpush3.bf16.msra.mxu1 %v4365_v17  ;;  %s2630_s15 = scalar_lea.vmem %s4406_s9, %s3283_s17 [#allocation7]  ;;  %s2634_s29 = scalar_lea.vmem %s4315_s10, %s3284_s25 [#allocation2] }
 0x46e   : > { %3531 = vmatprep.mubr.msk.f32.mxu0 %vm4121_vm0, %v4122_v1  ;;  %3538 = vmatprep.mubr.msk.f32.mxu1 %vm4121_vm0, %v4122_v1  ;;  %s3217_s10 = sshll.u32 %s4311_s26, 2  ;;  %s2989_s17 = sshll.u32 %s4406_s9, 4  ;;  %s4692_s17 = int_to_ptr.vmem [resolvable:$true] %s2989_s17 }
 0x46f   : > { %3685 = vmatprep.subr.bf16.mxu0 %v4120_v0  ;;  %3688 = vmatprep.subr.bf16.mxu1 %v4120_v0  ;;  %s300_s28 = scalar_lea.vmem [#allocation10], %s3217_s10  ;;  %s293_s7 = scalar_lea.vmem [#allocation8], %s3217_s10 }
 0x470   : > { %3532 = vmatmul.mubr.msk.f32.vlgmr.msra.gmra.mrb[18].mxu0 %vm321_vm7, %v4546_v4  ;;  %3539 = vmatmul.mubr.msk.f32.vlgmr.msra.gmra.mrb[18].mxu1 %vm321_vm7, %v4546_v4 }
 0x471   : > { %3687 = vmatpush3.bf16.msra.mxu0 %v4349_v8  ;;  %3690 = vmatpush3.bf16.msra.mxu1 %v4351_v12 }
 0x472   : > { %3545 = vmatprep.mubr.msk.f32.mxu0 %vm4121_vm0, %v4122_v1  ;;  %3552 = vmatprep.mubr.msk.f32.mxu1 %vm4121_vm0, %v4122_v1 }
 0x473   : > { %3691 = vmatprep.subr.bf16.mxu0 %v4120_v0  ;;  %3694 = vmatprep.subr.bf16.mxu1 %v4120_v0 }
 0x53f   : > { %v1715_v9 = vpop.f32.mrb[16].mxu0  ;;  %v1792_v10 = vpop.f32.mrb[16].mxu1 }
 0x540   : > { %v1719_v11 = vadd.f32 %v1715_v9, %v1642_v6  ;;  %v1796_v13 = vadd.f32 %v1792_v10, %v1643_v7  ;;  %v3519_v14 = vpop.f32.mrb[17].mxu0  ;;  %v3526_v18 = vpop.f32.mrb[17].mxu1 }
 0x542   : > { %v3259_v19 = vmul.f32 -1.442695, %v1719_v11  ;;  %v3261_v20 = vmul.f32 -1.442695, %v1796_v13 }
 0x543   : > { %v1869_v21 = vpop.f32.mrb[18].mxu0  ;;  %v1941_v22 = vpop.f32.mrb[18].mxu1 }
 0x544   : > { %3858 = vpow2.f32 %v3259_v19  ;;  %v3533_v24 = vpop.f32.mrb[19].mxu0  ;;  %v3540_v15 = vpop.f32.mrb[19].mxu1  ;;  %v1945_v25 = vadd.f32 %v1941_v22, %v1645_v23  ;;  %v1873_v27 = vadd.f32 %v1869_v21, %v1644_v26 }
 0x545   : > { %3860 = vpow2.f32 %v3261_v20  ;;  %v2293_v21 = vpop.permute.xlu1 %2292 }
 0x546   : > { %v3264_v2 = vmul.f32 -1.442695, %v1945_v25  ;;  %vm2294_vm1 = vcmp.eq.s32.totalorder %v2293_v21, 1 }
 0x548   : > { %3862 = vpow2.f32 %v3264_v2 }
 0x549   : > { %3864 = vtanh.f32 %v1873_v27  ;;  %v2304_v27 = vld [vmem:[%s2303_s14] sm:$0xf] }
 0x54e   : > { %v3859_v28 = vpop.eup %3858 }
 0x54f   : > { %v3861_v29 = vpop.eup %3860  ;;  %v1723_v30 = vadd.f32 1.0, %v3859_v28  ;;  %v2305_v28 = vld [vmem:[%s2303_s14 + $0x4] sm:$0xf] }
 0x550   : > { %v1800_v31 = vadd.f32 1.0, %v3861_v29 }
 0x551   : > { %3866 = vrcp.f32 %v1723_v30 }
 0x552   : > { %3868 = vrcp.f32 %v1800_v31  ;;  %v3863_v32 = vpop.eup %3862 }
 0x553   : > { %v3865_v33 = vpop.eup %3864  ;;  %v1949_v37 = vadd.f32 1.0, %v3863_v32 }
 0x555   : > { %3870 = vrcp.f32 %v1949_v37  ;;  %v2307_v37 = vld [vmem:[%s2303_s14 + $0xc] sm:$0xf] }
 0x55b   : > { %v3867_v34 = vpop.eup %3866 }
 0x55c   : > { %v3869_v35 = vpop.eup %3868  ;;  %v1953_v36 = vmul.f32 %v3867_v34, %v3865_v33 }
 0x55d   : > { %v1952_v38 = vmul.f32 %v3869_v35, %v4541_v61 }
 0x55f   : > { %v1954_v40 = vadd.f32 %v1953_v36, %v1952_v38  ;;  %v3871_v42 = vpop.eup %3870 }
 0x561   : > { %3872 = vtanh.f32 %v1954_v40  ;;  %v4577_v41 = vsel %vm1963_vm15, %v1954_v40, %v4541_v61  ;;  %v2306_v40 = vld [vmem:[%s2303_s14 + $0x8] sm:$0xf]  ;;  %s3304_s14 = sshll.u32 %s4180_s22, 9 }
 0x56b   : > { %v3873_v43 = vpop.eup %3872 }
 0x56c   : > { %v1956_v44 = vmul.f32 %v3873_v43, %v3871_v42 }
 0x56e   : > { %v4582_v45 = vsel %vm1963_vm15, %v1956_v44, %v4546_v4  ;;  %v1966_v46 = vsel %vm1963_vm15, %v1956_v44, 0.0 }
 0x56f   : > { %1969 = vst.msk [vmem:[%s1968_s23] sm:$0xf] %vm644_vm6, %v1966_v46  ;;  %3546 = vmatmul.mubr.msk.f32.vlgmr.msra.gmra.mrb[20].mxu0 %vm321_vm7, %v4582_v45  ;;  %3553 = vmatmul.mubr.msk.f32.vlgmr.msra.gmra.mrb[20].mxu1 %vm321_vm7, %v4582_v45  ;;  %s3292_s23 = sshll.u32 %s4457_s12, 2  ;;  %s3018_s12 = sshll.u32 %s300_s28, 4  ;;  %s4704_s12 = int_to_ptr.vmem [resolvable:$true] %s3018_s12 }
 0x570   : > { %3693 = vmatpush3.bf16.msra.mxu0 %v4359_v16  ;;  %3696 = vmatpush3.bf16.msra.mxu1 %v4365_v17  ;;  %s2961_s8 = scalar_lea.vmem %s4406_s9, %s3292_s23 [#allocation7]  ;;  %s4690_s23 = scalar_lea.hbm %s4799_s3, %s3304_s14 }
 0x571   : > { %3559 = vmatprep.mubr.msk.f32.mxu0 %vm4121_vm0, %v4122_v1  ;;  %3566 = vmatprep.mubr.msk.f32.mxu1 %vm4121_vm0, %v4122_v1 }
 0x572   : > { %3697 = vmatprep.subr.bf16.mxu0 %v4120_v0  ;;  %3700 = vmatprep.subr.bf16.mxu1 %v4120_v0 }
 0x573   : > { %3560 = vmatmul.mubr.msk.f32.vlgmr.msra.gmra.mrb[22].mxu0 %vm321_vm7, %v4582_v45  ;;  %3567 = vmatmul.mubr.msk.f32.vlgmr.msra.gmra.mrb[22].mxu1 %vm321_vm7, %v4582_v45 }
 0x574   : > { %3699 = vmatpush3.bf16.msra.mxu0 %v4349_v8  ;;  %3702 = vmatpush3.bf16.msra.mxu1 %v4351_v12 }
 0x575   : > { %3573 = vmatprep.mubr.msk.f32.mxu0 %vm4121_vm0, %v4122_v1  ;;  %3580 = vmatprep.mubr.msk.f32.mxu1 %vm4121_vm0, %v4122_v1 }
 0x576   : > { %3703 = vmatprep.subr.bf16.mxu0 %v4120_v0  ;;  %3706 = vmatprep.subr.bf16.mxu1 %v4120_v0 }
 0x642   : > { %v2046_v49 = vpop.f32.mrb[20].mxu0  ;;  %v2123_v50 = vpop.f32.mrb[20].mxu1 }
 0x643   : > { %v2050_v51 = vadd.f32 %v2046_v49, %v1973_v47  ;;  %v2127_v52 = vadd.f32 %v2123_v50, %v1974_v48  ;;  %v3547_v53 = vpop.f32.mrb[21].mxu0  ;;  %v3554_v54 = vpop.f32.mrb[21].mxu1 }
 0x644   : > { %v2624_v53 = vpop.permute.xlu0 %2623 }
 0x645   : > { %v3268_v55 = vmul.f32 -1.442695, %v2050_v51  ;;  %v3270_v56 = vmul.f32 -1.442695, %v2127_v52  ;;  %vm2625_vm2 = vcmp.eq.s32.totalorder %v2624_v53, 1 }
 0x646   : > { %v2200_v57 = vpop.f32.mrb[22].mxu0  ;;  %v2272_v58 = vpop.f32.mrb[22].mxu1 }
 0x647   : > { %3874 = vpow2.f32 %v3268_v55  ;;  %v3561_v60 = vpop.f32.mrb[23].mxu0  ;;  %v3568_v61 = vpop.f32.mrb[23].mxu1  ;;  %v2276_v62 = vadd.f32 %v2272_v58, %v1976_v59  ;;  %v2204_v4 = vadd.f32 %v2200_v57, %v1975_v63  ;;  %v2636_v63 = vld [vmem:[%s2634_s29 + $0x4] sm:$0xf] }
 0x648   : > { %3876 = vpow2.f32 %v3270_v56 }
 0x649   : > { %v3273_v3 = vmul.f32 -1.442695, %v2276_v62  ;;  %v2635_v62 = vld [vmem:[%s2634_s29] sm:$0xf] }
 0x64b   : > { %3878 = vpow2.f32 %v3273_v3 }
 0x64c   : > { %3880 = vtanh.f32 %v2204_v4 }
 0x651   : > { %v3875_v5 = vpop.eup %3874 }
 0x652   : > { %v3877_v6 = vpop.eup %3876  ;;  %v2054_v7 = vadd.f32 1.0, %v3875_v5 }
 0x653   : > { %v2131_v9 = vadd.f32 1.0, %v3877_v6 }
 0x654   : > { %3882 = vrcp.f32 %v2054_v7 }
 0x655   : > { %3884 = vrcp.f32 %v2131_v9  ;;  %v3879_v10 = vpop.eup %3878 }
 0x656   : > { %v3881_v11 = vpop.eup %3880  ;;  %v2280_v19 = vadd.f32 1.0, %v3879_v10 }
 0x658   : > { %3886 = vrcp.f32 %v2280_v19  ;;  %v2637_v19 = vld [vmem:[%s2634_s29 + $0x8] sm:$0xf] }
 0x65e   : > { %v3883_v13 = vpop.eup %3882 }
 0x65f   : > { %v3885_v14 = vpop.eup %3884  ;;  %v2284_v18 = vmul.f32 %v3883_v13, %v3881_v11  ;;  %v2638_v11 = vld [vmem:[%s2634_s29 + $0xc] sm:$0xf]  ;;  %s4683_s29 = scalar_lea.hbm %s4800_s4, %s3298_s13 }
 0x660   : > { %v2283_v20 = vmul.f32 %v3885_v14, %v4577_v41 }
 0x662   : > { %v2285_v22 = vadd.f32 %v2284_v18, %v2283_v20  ;;  %v3887_v24 = vpop.eup %3886 }
 0x664   : > { %3888 = vtanh.f32 %v2285_v22  ;;  %v4613_v23 = vsel %vm2294_vm1, %v2285_v22, %v4577_v41 }
 0x66e   : > { %v3889_v15 = vpop.eup %3888 }
 0x66f   : > { %v2287_v25 = vmul.f32 %v3889_v15, %v3887_v24 }
 0x671   : > { %v4618_v26 = vsel %vm2294_vm1, %v2287_v25, %v4582_v45  ;;  %v2297_v2 = vsel %vm2294_vm1, %v2287_v25, 0.0 }
 0x672   : > { %2300 = vst.msk [vmem:[%s2299_s16] sm:$0xf] %vm644_vm6, %v2297_v2  ;;  %3574 = vmatmul.mubr.msk.f32.vlgmr.msra.gmra.mrb[24].mxu0 %vm321_vm7, %v4618_v26  ;;  %3581 = vmatmul.mubr.msk.f32.vlgmr.msra.gmra.mrb[24].mxu1 %vm321_vm7, %v4618_v26  ;;  %s3005_s16 = sshll.u32 %s293_s7, 4  ;;  %s4685_s16 = int_to_ptr.vmem [resolvable:$true] %s3005_s16 }
 0x673   : > { %3705 = vmatpush3.bf16.msra.mxu0 %v4359_v16  ;;  %3708 = vmatpush3.bf16.msra.mxu1 %v4365_v17  ;;  %s3982_s14 = scalar_lea.vmem %s4685_s16, 64 }
 0x674   : > { %3587 = vmatprep.mubr.msk.f32.mxu0 %vm4121_vm0, %v4122_v1  ;;  %3594 = vmatprep.mubr.msk.f32.mxu1 %vm4121_vm0, %v4122_v1  ;;  %p3983_p12 = scmp.ne.s32.totalorder %s4685_s16, %s3982_s14 }
 0x675   : > { %3709 = vmatprep.subr.bf16.mxu0 %v4120_v0  ;;  %3712 = vmatprep.subr.bf16.mxu1 %v4120_v0 }
 0x676   : > { %3588 = vmatmul.mubr.msk.f32.vlgmr.msra.gmra.mrb[26].mxu0 %vm321_vm7, %v4618_v26  ;;  %3595 = vmatmul.mubr.msk.f32.vlgmr.msra.gmra.mrb[26].mxu1 %vm321_vm7, %v4618_v26  ;;  %p3984_p0 = pnand %p3983_p12, %p4823_p3 }
 0x677   : > { %3711 = vmatpush3.bf16.msra.mxu0 %v4349_v8  ;;  %3714 = vmatpush3.bf16.msra.mxu1 %v4351_v12 }
 0x678   : > { %3601 = vmatprep.mubr.msk.f32.mxu0 %vm4121_vm0, %v4122_v1  ;;  %3608 = vmatprep.mubr.msk.f32.mxu1 %vm4121_vm0, %v4122_v1  ;;  %p3985_p2 = pneg %p3984_p0 }
 0x679   : > { %3715 = vmatprep.subr.bf16.mxu0 %v4120_v0  ;;  %3718 = vmatprep.subr.bf16.mxu1 %v4120_v0 }
 0x745   : > { %v2377_v29 = vpop.f32.mrb[24].mxu0  ;;  %v2454_v30 = vpop.f32.mrb[24].mxu1 }
 0x746   : > { %v2381_v31 = vadd.f32 %v2377_v29, %v2304_v27  ;;  %v2458_v8 = vadd.f32 %v2454_v30, %v2305_v28  ;;  %v3575_v32 = vpop.f32.mrb[25].mxu0  ;;  %v3582_v12 = vpop.f32.mrb[25].mxu1 }
 0x747   : > { %v2955_v30 = vpop.permute.xlu1 %2954 }
 0x748   : > { %v3277_v33 = vmul.f32 -1.442695, %v2381_v31  ;;  %v3279_v34 = vmul.f32 -1.442695, %v2458_v8 }
 0x749   : > { %v2531_v35 = vpop.f32.mrb[26].mxu0  ;;  %v2603_v36 = vpop.f32.mrb[26].mxu1 }
 0x74a   : > { %3890 = vpow2.f32 %v3277_v33  ;;  %v3589_v38 = vpop.f32.mrb[27].mxu0  ;;  %v3596_v39 = vpop.f32.mrb[27].mxu1  ;;  %v2607_v0 = vadd.f32 %v2603_v36, %v2307_v37  ;;  %v2535_v42 = vadd.f32 %v2531_v35, %v2306_v40 }
 0x74b   : > { %3892 = vpow2.f32 %v3279_v34 }
 0x74c   : > { %v3282_v41 = vmul.f32 -1.442695, %v2607_v0 }
 0x74e   : > { %3894 = vpow2.f32 %v3282_v41 }
 0x74f   : > { %3896 = vtanh.f32 %v2535_v42 }
 0x754   : > { %v3891_v43 = vpop.eup %3890 }
 0x755   : > { %v3893_v44 = vpop.eup %3892  ;;  %v2385_v45 = vadd.f32 1.0, %v3891_v43 }
 0x756   : > { %v2462_v46 = vadd.f32 1.0, %v3893_v44 }
 0x757   : > { %3898 = vrcp.f32 %v2385_v45 }
 0x758   : > { %3900 = vrcp.f32 %v2462_v46  ;;  %v3895_v47 = vpop.eup %3894 }
 0x759   : > { %v3897_v48 = vpop.eup %3896  ;;  %v2611_v52 = vadd.f32 1.0, %v3895_v47 }
 0x75b   : > { %3902 = vrcp.f32 %v2611_v52 }
 0x761   : > { %v3899_v49 = vpop.eup %3898 }
 0x762   : > { %v3901_v50 = vpop.eup %3900  ;;  %v2615_v51 = vmul.f32 %v3899_v49, %v3897_v48 }
 0x763   : > { %v2614_v54 = vmul.f32 %v3901_v50, %v4613_v23 }
 0x765   : > { %v2616_v55 = vadd.f32 %v2615_v51, %v2614_v54  ;;  %v3903_v57 = vpop.eup %3902 }
 0x767   : > { %3904 = vtanh.f32 %v2616_v55  ;;  %v2626_v56 = vsel %vm2625_vm2, %v2616_v55, %v4613_v23 }
 0x771   : > { %v3905_v58 = vpop.eup %3904 }
 0x772   : > { %v2618_v59 = vmul.f32 %v3905_v58, %v3903_v57 }
 0x774   : > { %v4652_v60 = vsel %vm2625_vm2, %v2618_v59, %v4618_v26  ;;  %v2628_v61 = vsel %vm2625_vm2, %v2618_v59, 0.0 }
 0x775   : > { %2631 = vst.msk [vmem:[%s2630_s15] sm:$0xf] %vm644_vm6, %v2628_v61  ;;  %3602 = vmatmul.mubr.msk.f32.vlgmr.msra.gmra.mrb[28].mxu0 %vm321_vm7, %v4652_v60  ;;  %3609 = vmatmul.mubr.msk.f32.vlgmr.msra.gmra.mrb[28].mxu1 %vm321_vm7, %v4652_v60  ;;  %s4124_s15 = smov [#allocation8]  }
 0x776   : > { %3717 = vmatpush3.bf16.msra.mxu0 %v4359_v16  ;;  %3720 = vmatpush3.bf16.msra.mxu1 %v4365_v17  ;;  %s3986_s25 = sshll.u32 %s4124_s15, 4  ;;  %s3987_s25 = int_to_ptr.vmem [resolvable:$false] %s3986_s25 }
 0x777   : > { %3615 = vmatprep.mubr.msk.f32.mxu0 %vm4121_vm0, %v4122_v1  ;;  %3622 = vmatprep.mubr.msk.f32.mxu1 %vm4121_vm0, %v4122_v1  ;;  %vm2956_vm0 = vcmp.eq.s32.totalorder %v2955_v30, 1  ;;  %p3989_p5 = scmp.lt.s32.totalorder %s4685_s16, %s3987_s25 }
 0x779   : > { %3616 = vmatmul.mubr.msk.f32.vlgmr.msra.gmra.mrb[30].mxu0 %vm321_vm7, %v4652_v60  ;;  %3623 = vmatmul.mubr.msk.f32.vlgmr.msra.gmra.mrb[30].mxu1 %vm321_vm7, %v4652_v60 }
 0x848   : > { %v2708_v3 = vpop.f32.mrb[28].mxu0  ;;  %v2785_v16 = vpop.f32.mrb[28].mxu1 }
 0x849   : > { %v2712_v4 = vadd.f32 %v2708_v3, %v2635_v62  ;;  %v2789_v17 = vadd.f32 %v2785_v16, %v2636_v63  ;;  %v3603_v5 = vpop.f32.mrb[29].mxu0  ;;  %v3610_v6 = vpop.f32.mrb[29].mxu1 }
 0x84b   : > { %v3286_v7 = vmul.f32 -1.442695, %v2712_v4  ;;  %v3288_v9 = vmul.f32 -1.442695, %v2789_v17 }
 0x84c   : > { %v2862_v10 = vpop.f32.mrb[30].mxu0  ;;  %v2934_v1 = vpop.f32.mrb[30].mxu1 }
 0x84d   : > { %3906 = vpow2.f32 %v3286_v7  ;;  %v3617_v13 = vpop.f32.mrb[31].mxu0  ;;  %v3624_v14 = vpop.f32.mrb[31].mxu1  ;;  %v2938_v18 = vadd.f32 %v2934_v1, %v2638_v11  ;;  %v2866_v21 = vadd.f32 %v2862_v10, %v2637_v19 }
 0x84e   : > { %3908 = vpow2.f32 %v3288_v9 }
 0x84f   : > { %v3291_v20 = vmul.f32 -1.442695, %v2938_v18 }
 0x851   : > { %3910 = vpow2.f32 %v3291_v20 }
 0x852   : > { %3912 = vtanh.f32 %v2866_v21 }
 0x857   : > { %v3907_v22 = vpop.eup %3906 }
 0x858   : > { %v3909_v23 = vpop.eup %3908  ;;  %v2716_v24 = vadd.f32 1.0, %v3907_v22 }
 0x859   : > { %v2793_v15 = vadd.f32 1.0, %v3909_v23 }
 0x85a   : > { %3914 = vrcp.f32 %v2716_v24 }
 0x85b   : > { %3916 = vrcp.f32 %v2793_v15  ;;  %v3911_v25 = vpop.eup %3910 }
 0x85c   : > { %v3913_v26 = vpop.eup %3912  ;;  %v2942_v29 = vadd.f32 1.0, %v3911_v25 }
 0x85e   : > { %3918 = vrcp.f32 %v2942_v29 }
 0x864   : > { %v3915_v2 = vpop.eup %3914 }
 0x865   : > { %v3917_v27 = vpop.eup %3916  ;;  %v2946_v28 = vmul.f32 %v3915_v2, %v3913_v26 }
 0x866   : > { %v2945_v31 = vmul.f32 %v3917_v27, %v2626_v56 }
 0x868   : > { %v2947_v8 = vadd.f32 %v2946_v28, %v2945_v31  ;;  %v3919_v12 = vpop.eup %3918 }
 0x86a   : > { %3920 = vtanh.f32 %v2947_v8  ;;  %v2957_v32 = vsel %vm2956_vm0, %v2947_v8, %v2626_v56 }
 0x86b   : > { %2964 = vst.msk [vmem:[%s300_s28] sm:$0xf] %vm644_vm6, %v2957_v32  ;;  %s4702_s28 = scalar_lea.hbm %s4801_s5, %s3298_s13 }
 0x874   : > { %v3921_v33 = vpop.eup %3920 }
 0x875   : > { %v2949_v34 = vmul.f32 %v3921_v33, %v3919_v12 }
 0x877   : > { %v2958_v35 = vsel %vm2956_vm0, %v2949_v34, %v4652_v60  ;;  %v2959_v36 = vsel %vm2956_vm0, %v2949_v34, 0.0 }
 0x878   : > { %2962 = vst.msk [vmem:[%s2961_s8] sm:$0xf] %vm644_vm6, %v2959_v36  ;;  %2963 = vst.msk [vmem:[%s293_s7] sm:$0xf] %vm644_vm6, %v2958_v35  ;;  %s3988_s8 = scalar_lea.vmem %s3987_s25, 128 }
 0x879   : > { %p3990_p6 = scmp.lt.s32.totalorder %s3988_s8, %s3982_s14 }
 0x87b   : > { %p3991_p13 = por %p3990_p6, %p3989_p5 }
 0x87d   : > { %p3992_p1 = pnand %p3991_p13, %p3985_p2 }
 0x87f   : > { %3995 = shalt.err (!%p3992_p1)
}
 0x880   : > { %s3996_s11 = scalar_lea.hbm %s4683_s29, 64  ;;  %s4000_s10 = scalar_lea.hbm %s4800_s4, 128 }
 0x881   : > { %p3997_p11 = scmp.ne.s32.totalorder %s4683_s29, %s3996_s11  ;;  %p4001_p8 = scmp.lt.u32.totalorder %s4683_s29, %s4800_s4 }
 0x882   : > { %p4002_p4 = scmp.lt.u32.totalorder %s4000_s10, %s3996_s11  ;;  %p4004_p12 = scmp.lt.u32.totalorder %s3996_s11, %s4683_s29 }
 0x883   : > { %p3998_p10 = pnand %p3997_p11, %p4823_p3 }
 0x884   : > { %p4003_p9 = por %p4002_p4, %p4001_p8 }
 0x885   : > { %p3999_p7 = pneg %p3998_p10 }
 0x886   : > { %p4005_p0 = por %p4004_p12, %p4003_p9 }
 0x888   : > { %p4006_p2 = pnand %p4005_p0, %p3999_p7 }
 0x88a   : > { %4009 = shalt.err (!%p4006_p2)
}
 0x88b   : > { %3726 = dma.vmem_to_hbm [thread:$0]  (%p4823_p3), %s4685_s16, 64, %s4683_s29, %s4706_s0  }
 0x88c   : > { %s2966_s14 = scalar_lea.sflag [#allocation4], %s4311_s26  ;;  %s4010_s15 = scalar_lea.vmem %s4692_s17, 512 }
 0x88d   : > { %p4011_p5 = scmp.ne.s32.totalorder %s4692_s17, %s4010_s15  ;;  %s4125_s25 = smov [#allocation7]  }
 0x88e   : > { %s4014_s8 = sshll.u32 %s4125_s25, 4  ;;  %s4015_s8 = int_to_ptr.vmem [resolvable:$false] %s4014_s8 }
 0x88f   : > { %p4012_p6 = pnand %p4011_p5, %p4823_p3  ;;  %s4016_s11 = scalar_lea.vmem %s4015_s8, 1024 }
 0x890   : > { %p4017_p1 = scmp.lt.s32.totalorder %s4692_s17, %s4015_s8  ;;  %p4018_p11 = scmp.lt.s32.totalorder %s4016_s11, %s4010_s15 }
 0x891   : > { %p4013_p13 = pneg %p4012_p6 }
 0x892   : > { %p4019_p10 = por %p4018_p11, %p4017_p1 }
 0x894   : > { %p4020_p7 = pnand %p4019_p10, %p4013_p13 }
 0x896   : > { %4023 = shalt.err (!%p4020_p7)
}
 0x897   : > { %s4024_s16 = scalar_lea.hbm %s4690_s23, 512  ;;  %s4028_s7 = scalar_lea.hbm %s4799_s3, 1024 }
 0x898   : > { %p4025_p8 = scmp.ne.s32.totalorder %s4690_s23, %s4024_s16  ;;  %p4029_p12 = scmp.lt.u32.totalorder %s4690_s23, %s4799_s3 }
 0x899   : > { %p4030_p0 = scmp.lt.u32.totalorder %s4028_s7, %s4024_s16  ;;  %p4032_p5 = scmp.lt.u32.totalorder %s4024_s16, %s4690_s23 }
 0x89a   : > { %p4026_p4 = pnand %p4025_p8, %p4823_p3 }
 0x89b   : > { %p4031_p2 = por %p4030_p0, %p4029_p12 }
 0x89c   : > { %p4027_p9 = pneg %p4026_p4 }
 0x89d   : > { %p4033_p6 = por %p4032_p5, %p4031_p2 }
 0x89f   : > { %p4034_p13 = pnand %p4033_p6, %p4027_p9 }
 0x8a1   : > { %4037 = shalt.err (!%p4034_p13)
}
 0x8a2   : > { %s4126_s9 = smov 64   ;;  %s4127_s15 = smov 4  }
 0x8a3   : > { %3725 = dma.vmem_to_hbm [thread:$0]  (%p4823_p3), %s4692_s17, 512, %s4690_s23, %s2966_s14, %s4126_s9, %s4126_s9, %s4127_s15  }
 0x8a4   : > { %s4038_s25 = scalar_lea.vmem %s4704_s12, 64  ;;  %s4128_s8 = smov [#allocation10]  }
 0x8a5   : > { %p4039_p1 = scmp.ne.s32.totalorder %s4704_s12, %s4038_s25  ;;  %s4042_s11 = sshll.u32 %s4128_s8, 4  ;;  %s4043_s11 = int_to_ptr.vmem [resolvable:$false] %s4042_s11 }
 0x8a6   : > { %s4044_s16 = scalar_lea.vmem %s4043_s11, 128  ;;  %p4045_p7 = scmp.lt.s32.totalorder %s4704_s12, %s4043_s11 }
 0x8a7   : > { %p4040_p11 = pnand %p4039_p1, %p4823_p3  ;;  %p4046_p8 = scmp.lt.s32.totalorder %s4044_s16, %s4038_s25 }
 0x8a9   : > { %p4041_p10 = pneg %p4040_p11  ;;  %p4047_p4 = por %p4046_p8, %p4045_p7 }
 0x8ab   : > { %p4048_p9 = pnand %p4047_p4, %p4041_p10 }
 0x8ad   : > { %4051 = shalt.err (!%p4048_p9)
}
 0x8ae   : > { %s4052_s26 = scalar_lea.hbm %s4702_s28, 64  ;;  %s4056_s14 = scalar_lea.hbm %s4801_s5, 128 }
 0x8af   : > { %p4053_p12 = scmp.ne.s32.totalorder %s4702_s28, %s4052_s26  ;;  %p4057_p5 = scmp.lt.u32.totalorder %s4702_s28, %s4801_s5 }
 0x8b0   : > { %p4058_p6 = scmp.lt.u32.totalorder %s4056_s14, %s4052_s26  ;;  %p4060_p1 = scmp.lt.u32.totalorder %s4052_s26, %s4702_s28 }
 0x8b1   : > { %p4054_p0 = pnand %p4053_p12, %p4823_p3 }
 0x8b2   : > { %p4059_p13 = por %p4058_p6, %p4057_p5 }
 0x8b3   : > { %p4055_p2 = pneg %p4054_p0 }
 0x8b4   : > { %p4061_p11 = por %p4060_p1, %p4059_p13 }
 0x8b6   : > { %p4062_p10 = pnand %p4061_p11, %p4055_p2 }
 0x8b8   : > { %4065 = shalt.err (!%p4062_p10)
}
 0x8b9   : > { %3727 = dma.vmem_to_hbm [thread:$0]  (%p4823_p3), %s4704_s12, 64, %s4702_s28, %s4706_s0  }
 0x8ba PF: > { %s3030_s7 = sand.u32 1, %s4100_s18   ;;  %p4824_p7 = scmp.ne.s32.totalorder %s4810_s6, 0 }
 0x8bb   : > { %p4825_p8 = scmp.ge.s32.totalorder %s4112_s21, 2  ;;  %s3031_s10 = scalar_lea.sflag [#allocation4], %s3030_s7 }
 0x8bd   : > { %p3739_p4 = pnand %p4825_p8, %p4824_p7 }
 0x8bf   : > { %4091 = dma.done.wait (!%p3739_p4), %s3031_s10, 512  }
 0x8c0   : > { %4093 = vsyncadd (!%p3739_p4), %s3031_s10, 4294966784  ;;  %s4826_s22 = sadd.s32 4294967294, %s4112_s21  }
 0x8c1   : > { %s3039_s9 = sand.u32 1, %s4826_s22  }
 0x8c2   : > { %s3040_s15 = scalar_lea.sflag [#allocation9], %s3039_s9 }
 0x8c3   : > { %4095 = dma.done.wait (!%p3739_p4), %s3040_s15, 128  }
 0x8c4   : > { %4097 = vsyncadd (!%p3739_p4), %s3040_s15, 4294967168  ;;  %p25_p3 = scmp.ge.s32.totalorder %s4184_s24, 4   ;;  %s4827_s18 = smov %s4104_s19 }
 0x8c5   : > { %s4828_s19 = smov %s4108_s20  ;;  %s4829_s20 = smov %s4196_s27 }
 0x8c6   : > { %s4830_s21 = smov %s4184_s24  ;;  %27 = sbr.rel (!%p25_p3) target bundleno = 11 (0xb), region = 141 }
 0x8cd   :  { %3054 = vsyncpa [#allocation3], 1 }
 0x8ce   :  { %3056 = vsyncpa [#allocation3 + $0x1], 1 }
 0x8cf   :  { %3057 = vsyncpa [#allocation6], 1 }
 0x8d0   :  { %3059 = vsyncpa [#allocation6 + $0x1], 1 }
 0x8d1   :  { %3060 = vsyncpa [#allocation4], 1 }
 0x8d2   :  { %3062 = vsyncpa [#allocation4 + $0x1], 1 }
 0x8d3   :  { %3063 = vsyncpa [#allocation9], 1 }
 0x8d4   :  { %3065 = vsyncpa [#allocation9 + $0x1], 1 }

</bundles_post_ra>
